<compile_context>
chip_gen: v7x
topology: tpu7x:2x2x1
jax: 0.10.0
libtpu: 0.0.40
codegen_flags: <defaults>
</compile_context>

<pallas_src>
import functools

import jax
import jax.numpy as jnp
from jax.experimental import pallas as pl
from jax.experimental.pallas import tpu as pltpu

EPS = 1e-5
_UNROLL_ITERS = 8   # fully unroll the weight-tied loop up to this many iters


# ----------------------------- kernel ---------------------------------------
def _make_fold_block_kernel(N, H, W, Cin, Cmid, Cout, iters):
  NH = N * H
  WCi, WCm, WCo = W * Cin, W * Cmid, W * Cout

  def kernel(x_ref, m1_ref, p1_ref, g1_ref, b1_ref,
             m2_ref, p2_ref, g2_ref, b2_ref,
             o_ref, xpad, ypad):
    f32 = jnp.float32
    bf16 = jnp.bfloat16

    # H-halo rows are zeroed once and stay zero (only the interior is ever
    # rewritten).  The W padding is folded into the banded weights, so rows
    # are fully lane-dense (width W*C) with no W halo.
    xpad[:, 0:1, :] = jnp.zeros((N, 1, WCi), f32)
    xpad[:, H + 1:H + 2, :] = jnp.zeros((N, 1, WCi), f32)
    ypad[:, 0:1, :] = jnp.zeros((N, 1, WCm), f32)
    ypad[:, H + 1:H + 2, :] = jnp.zeros((N, 1, WCm), f32)
    xpad[:, 1:H + 1, :] = x_ref[...]

    def conv_bn(src_pad, m_ref, p_ref, g_ref, b_ref, wc_in, wc_out, relu):
      # Load the padded activations once, cast once to bf16, feed three
      # row-shifted windows to the MXU against banded (wc_in, wc_out) weights;
      # f32 accumulation.
      src = src_pad[...].astype(bf16)                    # (N, H+2, wc_in)
      acc = jnp.zeros((NH, wc_out), f32)
      for dh in range(3):
        lhs = src[:, dh:dh + H, :].reshape(NH, wc_in)
        acc = acc + jnp.dot(lhs, m_ref[dh], preferred_element_type=f32)
      # One-pass batch statistics: sublane lane-sums + tiny channel-averaging
      # matmul; BN folded into a single scale/shift affine.
      s = jnp.sum(acc, axis=0, keepdims=True)            # (1, wc_out)
      q = jnp.sum(acc * acc, axis=0, keepdims=True)      # (1, wc_out)
      mean = jnp.dot(s, p_ref[...], preferred_element_type=f32)
      ex2 = jnp.dot(q, p_ref[...], preferred_element_type=f32)
      scale = jax.lax.rsqrt(ex2 - mean * mean + EPS) * g_ref[...]
      shift = b_ref[...] - mean * scale
      y = acc * scale + shift
      return jnp.maximum(y, 0.0) if relu else y

    def step(x_res, write_back=True):
      y = conv_bn(xpad, m1_ref, p1_ref, g1_ref, b1_ref, WCi, WCm, relu=True)
      ypad[:, 1:H + 1, :] = y.reshape(N, H, WCm)
      z = conv_bn(ypad, m2_ref, p2_ref, g2_ref, b2_ref, WCm, WCo, relu=False)
      out = jnp.maximum(z + x_res, 0.0)                  # f32 residual carry
      if write_back:                                     # feed next iteration
        xpad[:, 1:H + 1, :] = out.reshape(N, H, WCo)
      return out

    x_res = x_ref[...].reshape(NH, WCi)
    if iters <= _UNROLL_ITERS:
      for t in range(iters):                             # trace-time unroll
        x_res = step(x_res, write_back=(t + 1 < iters))
    else:
      x_res = jax.lax.fori_loop(0, iters, lambda _, c: step(c), x_res)

    o_ref[...] = x_res.reshape(N, H, WCo)                # lane-dense store

  return kernel


# --------------------------- wrapper helpers ---------------------------------
def _banded_conv_matrices(w_hwio, W):
  """(3,3,Ci,Co) HWIO conv weights -> (3, W*Ci, W*Co) banded matrices.

  M[kh][(w+kw-1)*Ci + ci, w*Co + co] = w_hwio[kh, kw, ci, co], with taps that
  fall outside [0, W) dropped (they would multiply the zero W-padding).
  """
  KH, KW, Ci, Co = w_hwio.shape
  i = jnp.arange(W * Ci)
  j = jnp.arange(W * Co)
  si, ci = i // Ci, i % Ci
  wj, co = j // Co, j % Co
  kw = si[:, None] - wj[None, :] + 1                     # (W*Ci, W*Co)
  valid = (kw >= 0) & (kw < KW)
  kw_c = jnp.clip(kw, 0, KW - 1)
  m = w_hwio[:, kw_c, ci[:, None], co[None, :]]          # (KH, W*Ci, W*Co)
  return jnp.where(valid[None], m, 0.0)


def _channel_avg_matrix(W, C, nhw):
  """(W*C, W*C) matrix: lane-sums -> per-channel mean replicated over w."""
  lane = jnp.arange(W * C)
  same = (lane[:, None] % C) == (lane[None, :] % C)
  return same.astype(jnp.float32) / float(nhw)


def _spec(shape):
  zeros = (0,) * len(shape)
  return pl.BlockSpec(shape, lambda i, zeros=zeros: zeros)


# ------------------------------ wrappers -------------------------------------
def fold_basic_block_nhwc(x_nhwc, w1_hwio, g1, b1, w2_hwio, g2, b2, *, iters):
  """x_nhwc: (N,H,W,Cin) f32.  w*_hwio: (3,3,Ci,Co).  Returns (N,H,W,Cout)."""
  N, H, W, Cin = x_nhwc.shape
  Cmid = w1_hwio.shape[-1]
  Cout = w2_hwio.shape[-1]
  assert Cout == Cin, "identity-shortcut configuration requires Cout == Cin"
  NHW = N * H * W

  m1 = _banded_conv_matrices(w1_hwio.astype(jnp.float32), W).astype(jnp.bfloat16)
  m2 = _banded_conv_matrices(w2_hwio.astype(jnp.float32), W).astype(jnp.bfloat16)
  p1 = _channel_avg_matrix(W, Cmid, NHW)
  p2 = _channel_avg_matrix(W, Cout, NHW)
  g1f = jnp.tile(g1.astype(jnp.float32), W).reshape(1, W * Cmid)
  b1f = jnp.tile(b1.astype(jnp.float32), W).reshape(1, W * Cmid)
  g2f = jnp.tile(g2.astype(jnp.float32), W).reshape(1, W * Cout)
  b2f = jnp.tile(b2.astype(jnp.float32), W).reshape(1, W * Cout)

  x_flat = x_nhwc.astype(jnp.float32).reshape(N, H, W * Cin)   # lane-dense

  kernel = _make_fold_block_kernel(N, H, W, Cin, Cmid, Cout, iters)

  out = pl.pallas_call(
      kernel,
      out_shape=jax.ShapeDtypeStruct((N, H, W * Cout), jnp.float32),
      grid=(1,),
      in_specs=[_spec(x_flat.shape),
                _spec(m1.shape), _spec(p1.shape), _spec(g1f.shape), _spec(b1f.shape),
                _spec(m2.shape), _spec(p2.shape), _spec(g2f.shape), _spec(b2f.shape)],
      out_specs=_spec((N, H, W * Cout)),
      scratch_shapes=[
          pltpu.VMEM((N, H + 2, W * Cin), jnp.float32),   # H-padded x (lane-dense)
          pltpu.VMEM((N, H + 2, W * Cmid), jnp.float32),  # H-padded conv1 output
      ],
      input_output_aliases={0: 0},                        # reuse x's HBM buffer
      compiler_params=pltpu.CompilerParams(
          dimension_semantics=("arbitrary",)),
  )(x_flat, m1, p1, g1f, b1f, m2, p2, g2f, b2f)

  return out.reshape(N, H, W, Cout)


def fold_basic_block_nchw(x_nchw, w1_oihw, g1, b1, w2_oihw, g2, b2, *, iters):
  """PyTorch-facing wrapper: NCHW in, NCHW out; conv weights in OIHW."""
  x_nhwc = jnp.transpose(x_nchw, (0, 2, 3, 1)).astype(jnp.float32)
  w1_hwio = jnp.transpose(w1_oihw, (2, 3, 1, 0))
  w2_hwio = jnp.transpose(w2_oihw, (2, 3, 1, 0))
  out = fold_basic_block_nhwc(x_nhwc, w1_hwio, g1, b1, w2_hwio, g2, b2,
                              iters=iters)
  return jnp.transpose(out, (0, 3, 1, 2))


# ---------------- pure-JAX reference (NCHW, PyTorch conventions) -------------
def _reference_nchw(x, w1, g1, b1, w2, g2, b2, iters, *, bf16_conv_ops=False):
  def conv3x3(x, w):
    if bf16_conv_ops:                     # mirror the kernel's bf16 MXU operands
      x = x.astype(jnp.bfloat16)
      w = w.astype(jnp.bfloat16)
    return jax.lax.conv_general_dilated(
        x, w, window_strides=(1, 1), padding=((1, 1), (1, 1)),
        dimension_numbers=("NCHW", "OIHW", "NCHW"),
        preferred_element_type=jnp.float32)

  def bn(x, g, b):
    mu = jnp.mean(x, axis=(0, 2, 3), keepdims=True)
    var = jnp.mean((x - mu) ** 2, axis=(0, 2, 3), keepdims=True)
    return ((x - mu) * jax.lax.rsqrt(var + EPS) * g.reshape(1, -1, 1, 1)
            + b.reshape(1, -1, 1, 1))

  for _ in range(iters):
    x_i = x
    x = jax.nn.relu(bn(conv3x3(x, w1), g1, b1))
    x = bn(conv3x3(x, w2), g2, b2)
    x = jax.nn.relu(x + x_i)
  return x


if __name__ == "__main__":
  # FoldBasicBlock(in_planes=8, planes=8, wider=1, stride=1, iters=2)
  # -> width = 8, identity shortcut.  W*C = 128 (exactly one lane-tile).
  N, C, H, W = 2, 8, 16, 16
  planes, wider, iters = C, 1, 2
  width = planes * wider

  key = jax.random.PRNGKey(0)
  kx, kw1, kw2, kg1, kb1, kg2, kb2 = jax.random.split(key, 7)

  x = jax.random.normal(kx, (N, C, H, W), jnp.float32)               # NCHW
  w1 = jax.random.normal(kw1, (width, C, 3, 3), jnp.float32) * 0.2   # OIHW
  w2 = jax.random.normal(kw2, (planes, width, 3, 3), jnp.float32) * 0.2
  g1 = jax.random.uniform(kg1, (width,), jnp.float32, 0.5, 1.5)
  b1 = jax.random.normal(kb1, (width,), jnp.float32) * 0.1
  g2 = jax.random.uniform(kg2, (planes,), jnp.float32, 0.5, 1.5)
  b2 = jax.random.normal(kb2, (planes,), jnp.float32) * 0.1

  run = jax.jit(functools.partial(fold_basic_block_nchw, iters=iters))
  out = jax.block_until_ready(run(x, w1, g1, b1, w2, g2, b2))
  assert out.shape == (N, planes, H, W)

  # Tight check against a reference with the same bf16 conv operands
  # (f32 accumulation) -> validates the kernel math modulo accumulation order
  # and the BN scale/shift refactor (f32-epsilon-level differences only).
  ref_bf16 = jax.block_until_ready(
      _reference_nchw(x, w1, g1, b1, w2, g2, b2, iters, bf16_conv_ops=True))
  err_bf16 = float(jnp.max(jnp.abs(out - ref_bf16)))
  assert jnp.allclose(out, ref_bf16, rtol=2e-3, atol=2e-3), (
      f"bf16-matched reference max abs err {err_bf16}")

  # Sanity guard against the full-f32 reference (difference is only the
  # bf16 quantization of the MXU conv operands).
  ref_f32 = jax.block_until_ready(
      _reference_nchw(x, w1, g1, b1, w2, g2, b2, iters, bf16_conv_ops=False))
  err_f32 = float(jnp.max(jnp.abs(out - ref_f32)))
  assert err_f32 < 0.1, f"f32 reference max abs err {err_f32}"

  print("KERNEL_OK")
</pallas_src>

<mosaic_0001>
module attributes {stable_mosaic.version = 11 : i64} {
  func.func @kernel(%arg0: i32, %arg1: memref<2x16x128xf32, #tpu.memory_space<vmem>>, %arg2: memref<3x128x128xbf16, #tpu.memory_space<vmem>>, %arg3: memref<128x128xf32, #tpu.memory_space<vmem>>, %arg4: memref<1x128xf32, #tpu.memory_space<vmem>>, %arg5: memref<1x128xf32, #tpu.memory_space<vmem>>, %arg6: memref<3x128x128xbf16, #tpu.memory_space<vmem>>, %arg7: memref<128x128xf32, #tpu.memory_space<vmem>>, %arg8: memref<1x128xf32, #tpu.memory_space<vmem>>, %arg9: memref<1x128xf32, #tpu.memory_space<vmem>>, %arg10: memref<2x16x128xf32, #tpu.memory_space<vmem>>, %arg11: memref<2x18x128xf32, #tpu.memory_space<vmem>>, %arg12: memref<2x18x128xf32, #tpu.memory_space<vmem>>) attributes {dimension_semantics = [#tpu.dimension_semantics<arbitrary>], iteration_bounds = array<i64: 1>, scalar_prefetch = 0 : i64, scratch_operands = 2 : i64, tpu.core_type = #tpu.core_type<tc>, window_params = [{pipeline_mode = #tpu.pipeline_mode<synchronous>, transform_indices = @transform_0, window_bounds = array<i64: 2, 16, 128>}, {pipeline_mode = #tpu.pipeline_mode<synchronous>, transform_indices = @transform_1, window_bounds = array<i64: 3, 128, 128>}, {pipeline_mode = #tpu.pipeline_mode<synchronous>, transform_indices = @transform_2, window_bounds = array<i64: 128, 128>}, {pipeline_mode = #tpu.pipeline_mode<synchronous>, transform_indices = @transform_3, window_bounds = array<i64: 1, 128>}, {pipeline_mode = #tpu.pipeline_mode<synchronous>, transform_indices = @transform_4, window_bounds = array<i64: 1, 128>}, {pipeline_mode = #tpu.pipeline_mode<synchronous>, transform_indices = @transform_5, window_bounds = array<i64: 3, 128, 128>}, {pipeline_mode = #tpu.pipeline_mode<synchronous>, transform_indices = @transform_6, window_bounds = array<i64: 128, 128>}, {pipeline_mode = #tpu.pipeline_mode<synchronous>, transform_indices = @transform_7, window_bounds = array<i64: 1, 128>}, {pipeline_mode = #tpu.pipeline_mode<synchronous>, transform_indices = @transform_8, window_bounds = array<i64: 1, 128>}, {pipeline_mode = #tpu.pipeline_mode<synchronous>, transform_indices = @transform_9, window_bounds = array<i64: 2, 16, 128>}]} {
    %cst = arith.constant 0.000000e+00 : f32
    %0 = vector.broadcast %cst : f32 to vector<2x1x128xf32>
    %c0 = arith.constant 0 : index
    %c0_0 = arith.constant 0 : index
    %c0_1 = arith.constant 0 : index
    %1 = vector.load %arg11[%c0, %c0_0, %c0_1] : memref<2x18x128xf32, #tpu.memory_space<vmem>>, vector<2x1x128xf32>
    tpu.vector_store %arg11[%c0, %c0_0, %c0_1], %0 {strides = array<i32>} : memref<2x18x128xf32, #tpu.memory_space<vmem>>, vector<2x1x128xf32>,
    %cst_2 = arith.constant 0.000000e+00 : f32
    %2 = vector.broadcast %cst_2 : f32 to vector<2x1x128xf32>
    %c0_3 = arith.constant 0 : index
    %c17 = arith.constant 17 : index
    %c0_4 = arith.constant 0 : index
    %3 = vector.load %arg11[%c0_3, %c17, %c0_4] : memref<2x18x128xf32, #tpu.memory_space<vmem>>, vector<2x1x128xf32>
    tpu.vector_store %arg11[%c0_3, %c17, %c0_4], %2 {strides = array<i32>} : memref<2x18x128xf32, #tpu.memory_space<vmem>>, vector<2x1x128xf32>,
    %cst_5 = arith.constant 0.000000e+00 : f32
    %4 = vector.broadcast %cst_5 : f32 to vector<2x1x128xf32>
    %c0_6 = arith.constant 0 : index
    %c0_7 = arith.constant 0 : index
    %c0_8 = arith.constant 0 : index
    %5 = vector.load %arg12[%c0_6, %c0_7, %c0_8] : memref<2x18x128xf32, #tpu.memory_space<vmem>>, vector<2x1x128xf32>
    tpu.vector_store %arg12[%c0_6, %c0_7, %c0_8], %4 {strides = array<i32>} : memref<2x18x128xf32, #tpu.memory_space<vmem>>, vector<2x1x128xf32>,
    %cst_9 = arith.constant 0.000000e+00 : f32
    %6 = vector.broadcast %cst_9 : f32 to vector<2x1x128xf32>
    %c0_10 = arith.constant 0 : index
    %c17_11 = arith.constant 17 : index
    %c0_12 = arith.constant 0 : index
    %7 = vector.load %arg12[%c0_10, %c17_11, %c0_12] : memref<2x18x128xf32, #tpu.memory_space<vmem>>, vector<2x1x128xf32>
    tpu.vector_store %arg12[%c0_10, %c17_11, %c0_12], %6 {strides = array<i32>} : memref<2x18x128xf32, #tpu.memory_space<vmem>>, vector<2x1x128xf32>,
    %c0_13 = arith.constant 0 : index
    %c0_14 = arith.constant 0 : index
    %c0_15 = arith.constant 0 : index
    %8 = vector.load %arg1[%c0_13, %c0_14, %c0_15] : memref<2x16x128xf32, #tpu.memory_space<vmem>>, vector<2x16x128xf32>
    %c0_16 = arith.constant 0 : index
    %c1 = arith.constant 1 : index
    %c0_17 = arith.constant 0 : index
    %9 = vector.load %arg11[%c0_16, %c1, %c0_17] : memref<2x18x128xf32, #tpu.memory_space<vmem>>, vector<2x16x128xf32>
    tpu.vector_store %arg11[%c0_16, %c1, %c0_17], %8 {strides = array<i32>} : memref<2x18x128xf32, #tpu.memory_space<vmem>>, vector<2x16x128xf32>,
    %c0_18 = arith.constant 0 : index
    %c0_19 = arith.constant 0 : index
    %c0_20 = arith.constant 0 : index
    %10 = vector.load %arg1[%c0_18, %c0_19, %c0_20] : memref<2x16x128xf32, #tpu.memory_space<vmem>>, vector<2x16x128xf32>
    %11 = vector.shape_cast %10 : vector<2x16x128xf32> to vector<32x128xf32>
    %c0_21 = arith.constant 0 : index
    %c0_22 = arith.constant 0 : index
    %c0_23 = arith.constant 0 : index
    %12 = vector.load %arg11[%c0_21, %c0_22, %c0_23] : memref<2x18x128xf32, #tpu.memory_space<vmem>>, vector<2x18x128xf32>
    %13 = arith.truncf %12 : vector<2x18x128xf32> to vector<2x18x128xbf16>
    %cst_24 = arith.constant 0.000000e+00 : f32
    %14 = vector.broadcast %cst_24 : f32 to vector<32x128xf32>
    %15 = vector.extract_strided_slice %13 {offsets = [0, 0, 0], sizes = [2, 16, 128], strides = [1, 1, 1]} : vector<2x18x128xbf16> to vector<2x16x128xbf16>
    %16 = vector.shape_cast %15 : vector<2x16x128xbf16> to vector<32x128xbf16>
    %c0_25 = arith.constant 0 : index
    %c0_26 = arith.constant 0 : index
    %c0_27 = arith.constant 0 : index
    %17 = vector.load %arg2[%c0_25, %c0_26, %c0_27] : memref<3x128x128xbf16, #tpu.memory_space<vmem>>, vector<1x128x128xbf16>
    %18 = vector.shape_cast %17 : vector<1x128x128xbf16> to vector<128x128xbf16>
    %cst_28 = arith.constant dense<0.000000e+00> : vector<32x128xf32>
    %19 = tpu.matmul %16, %18, %cst_28 {dimension_numbers = #tpu.dot_dimension_numbers<[1], [0], [0], [1], [0, 0, 1, 1], [], []>} : vector<32x128xbf16>, vector<128x128xbf16>, vector<32x128xf32> -> vector<32x128xf32>
    %20 = arith.addf %14, %19 : vector<32x128xf32>
    %21 = vector.extract_strided_slice %13 {offsets = [0, 1, 0], sizes = [2, 16, 128], strides = [1, 1, 1]} : vector<2x18x128xbf16> to vector<2x16x128xbf16>
    %22 = vector.shape_cast %21 : vector<2x16x128xbf16> to vector<32x128xbf16>
    %c1_29 = arith.constant 1 : index
    %c0_30 = arith.constant 0 : index
    %c0_31 = arith.constant 0 : index
    %23 = vector.load %arg2[%c1_29, %c0_30, %c0_31] : memref<3x128x128xbf16, #tpu.memory_space<vmem>>, vector<1x128x128xbf16>
    %24 = vector.shape_cast %23 : vector<1x128x128xbf16> to vector<128x128xbf16>
    %cst_32 = arith.constant dense<0.000000e+00> : vector<32x128xf32>
    %25 = tpu.matmul %22, %24, %cst_32 {dimension_numbers = #tpu.dot_dimension_numbers<[1], [0], [0], [1], [0, 0, 1, 1], [], []>} : vector<32x128xbf16>, vector<128x128xbf16>, vector<32x128xf32> -> vector<32x128xf32>
    %26 = arith.addf %20, %25 : vector<32x128xf32>
    %27 = vector.extract_strided_slice %13 {offsets = [0, 2, 0], sizes = [2, 16, 128], strides = [1, 1, 1]} : vector<2x18x128xbf16> to vector<2x16x128xbf16>
    %28 = vector.shape_cast %27 : vector<2x16x128xbf16> to vector<32x128xbf16>
    %c2 = arith.constant 2 : index
    %c0_33 = arith.constant 0 : index
    %c0_34 = arith.constant 0 : index
    %29 = vector.load %arg2[%c2, %c0_33, %c0_34] : memref<3x128x128xbf16, #tpu.memory_space<vmem>>, vector<1x128x128xbf16>
    %30 = vector.shape_cast %29 : vector<1x128x128xbf16> to vector<128x128xbf16>
    %cst_35 = arith.constant dense<0.000000e+00> : vector<32x128xf32>
    %31 = tpu.matmul %28, %30, %cst_35 {dimension_numbers = #tpu.dot_dimension_numbers<[1], [0], [0], [1], [0, 0, 1, 1], [], []>} : vector<32x128xbf16>, vector<128x128xbf16>, vector<32x128xf32> -> vector<32x128xf32>
    %32 = arith.addf %26, %31 : vector<32x128xf32>
    %cst_36 = arith.constant dense<0.000000e+00> : vector<128xf32>
    %33 = vector.multi_reduction <add>, %32, %cst_36 [0] : vector<32x128xf32> to vector<128xf32>
    %34 = vector.shape_cast %33 : vector<128xf32> to vector<1x128xf32>
    %35 = arith.mulf %32, %32 : vector<32x128xf32>
    %cst_37 = arith.constant dense<0.000000e+00> : vector<128xf32>
    %36 = vector.multi_reduction <add>, %35, %cst_37 [0] : vector<32x128xf32> to vector<128xf32>
    %37 = vector.shape_cast %36 : vector<128xf32> to vector<1x128xf32>
    %c0_38 = arith.constant 0 : index
    %c0_39 = arith.constant 0 : index
    %38 = vector.load %arg3[%c0_38, %c0_39] : memref<128x128xf32, #tpu.memory_space<vmem>>, vector<128x128xf32>
    %cst_40 = arith.constant dense<0.000000e+00> : vector<1x128xf32>
    %39 = tpu.matmul %34, %38, %cst_40 {dimension_numbers = #tpu.dot_dimension_numbers<[1], [0], [0], [1], [0, 0, 1, 1], [], []>} : vector<1x128xf32>, vector<128x128xf32>, vector<1x128xf32> -> vector<1x128xf32>
    %c0_41 = arith.constant 0 : index
    %c0_42 = arith.constant 0 : index
    %40 = vector.load %arg3[%c0_41, %c0_42] : memref<128x128xf32, #tpu.memory_space<vmem>>, vector<128x128xf32>
    %cst_43 = arith.constant dense<0.000000e+00> : vector<1x128xf32>
    %41 = tpu.matmul %37, %40, %cst_43 {dimension_numbers = #tpu.dot_dimension_numbers<[1], [0], [0], [1], [0, 0, 1, 1], [], []>} : vector<1x128xf32>, vector<128x128xf32>, vector<1x128xf32> -> vector<1x128xf32>
    %42 = arith.mulf %39, %39 : vector<1x128xf32>
    %43 = arith.subf %41, %42 : vector<1x128xf32>
    %cst_44 = arith.constant 9.99999974E-6 : f32
    %44 = vector.broadcast %cst_44 : f32 to vector<1x128xf32>
    %45 = arith.addf %43, %44 : vector<1x128xf32>
    %46 = math.rsqrt %45 : vector<1x128xf32>
    %c0_45 = arith.constant 0 : index
    %c0_46 = arith.constant 0 : index
    %47 = vector.load %arg4[%c0_45, %c0_46] : memref<1x128xf32, #tpu.memory_space<vmem>>, vector<1x128xf32>
    %48 = arith.mulf %46, %47 : vector<1x128xf32>
    %c0_47 = arith.constant 0 : index
    %c0_48 = arith.constant 0 : index
    %49 = vector.load %arg5[%c0_47, %c0_48] : memref<1x128xf32, #tpu.memory_space<vmem>>, vector<1x128xf32>
    %50 = arith.mulf %39, %48 : vector<1x128xf32>
    %51 = arith.subf %49, %50 : vector<1x128xf32>
    %52 = vector.broadcast %48 : vector<1x128xf32> to vector<32x128xf32>
    %53 = arith.mulf %32, %52 : vector<32x128xf32>
    %54 = vector.broadcast %51 : vector<1x128xf32> to vector<32x128xf32>
    %55 = arith.addf %53, %54 : vector<32x128xf32>
    %cst_49 = arith.constant 0.000000e+00 : f32
    %56 = vector.broadcast %cst_49 : f32 to vector<32x128xf32>
    %57 = arith.maximumf %55, %56 : vector<32x128xf32>
    %58 = vector.shape_cast %57 : vector<32x128xf32> to vector<2x16x128xf32>
    %c0_50 = arith.constant 0 : index
    %c1_51 = arith.constant 1 : index
    %c0_52 = arith.constant 0 : index
    %59 = vector.load %arg12[%c0_50, %c1_51, %c0_52] : memref<2x18x128xf32, #tpu.memory_space<vmem>>, vector<2x16x128xf32>
    tpu.vector_store %arg12[%c0_50, %c1_51, %c0_52], %58 {strides = array<i32>} : memref<2x18x128xf32, #tpu.memory_space<vmem>>, vector<2x16x128xf32>,
    %c0_53 = arith.constant 0 : index
    %c0_54 = arith.constant 0 : index
    %c0_55 = arith.constant 0 : index
    %60 = vector.load %arg12[%c0_53, %c0_54, %c0_55] : memref<2x18x128xf32, #tpu.memory_space<vmem>>, vector<2x18x128xf32>
    %61 = arith.truncf %60 : vector<2x18x128xf32> to vector<2x18x128xbf16>
    %cst_56 = arith.constant 0.000000e+00 : f32
    %62 = vector.broadcast %cst_56 : f32 to vector<32x128xf32>
    %63 = vector.extract_strided_slice %61 {offsets = [0, 0, 0], sizes = [2, 16, 128], strides = [1, 1, 1]} : vector<2x18x128xbf16> to vector<2x16x128xbf16>
    %64 = vector.shape_cast %63 : vector<2x16x128xbf16> to vector<32x128xbf16>
    %c0_57 = arith.constant 0 : index
    %c0_58 = arith.constant 0 : index
    %c0_59 = arith.constant 0 : index
    %65 = vector.load %arg6[%c0_57, %c0_58, %c0_59] : memref<3x128x128xbf16, #tpu.memory_space<vmem>>, vector<1x128x128xbf16>
    %66 = vector.shape_cast %65 : vector<1x128x128xbf16> to vector<128x128xbf16>
    %cst_60 = arith.constant dense<0.000000e+00> : vector<32x128xf32>
    %67 = tpu.matmul %64, %66, %cst_60 {dimension_numbers = #tpu.dot_dimension_numbers<[1], [0], [0], [1], [0, 0, 1, 1], [], []>} : vector<32x128xbf16>, vector<128x128xbf16>, vector<32x128xf32> -> vector<32x128xf32>
    %68 = arith.addf %62, %67 : vector<32x128xf32>
    %69 = vector.extract_strided_slice %61 {offsets = [0, 1, 0], sizes = [2, 16, 128], strides = [1, 1, 1]} : vector<2x18x128xbf16> to vector<2x16x128xbf16>
    %70 = vector.shape_cast %69 : vector<2x16x128xbf16> to vector<32x128xbf16>
    %c1_61 = arith.constant 1 : index
    %c0_62 = arith.constant 0 : index
    %c0_63 = arith.constant 0 : index
    %71 = vector.load %arg6[%c1_61, %c0_62, %c0_63] : memref<3x128x128xbf16, #tpu.memory_space<vmem>>, vector<1x128x128xbf16>
    %72 = vector.shape_cast %71 : vector<1x128x128xbf16> to vector<128x128xbf16>
    %cst_64 = arith.constant dense<0.000000e+00> : vector<32x128xf32>
    %73 = tpu.matmul %70, %72, %cst_64 {dimension_numbers = #tpu.dot_dimension_numbers<[1], [0], [0], [1], [0, 0, 1, 1], [], []>} : vector<32x128xbf16>, vector<128x128xbf16>, vector<32x128xf32> -> vector<32x128xf32>
    %74 = arith.addf %68, %73 : vector<32x128xf32>
    %75 = vector.extract_strided_slice %61 {offsets = [0, 2, 0], sizes = [2, 16, 128], strides = [1, 1, 1]} : vector<2x18x128xbf16> to vector<2x16x128xbf16>
    %76 = vector.shape_cast %75 : vector<2x16x128xbf16> to vector<32x128xbf16>
    %c2_65 = arith.constant 2 : index
    %c0_66 = arith.constant 0 : index
    %c0_67 = arith.constant 0 : index
    %77 = vector.load %arg6[%c2_65, %c0_66, %c0_67] : memref<3x128x128xbf16, #tpu.memory_space<vmem>>, vector<1x128x128xbf16>
    %78 = vector.shape_cast %77 : vector<1x128x128xbf16> to vector<128x128xbf16>
    %cst_68 = arith.constant dense<0.000000e+00> : vector<32x128xf32>
    %79 = tpu.matmul %76, %78, %cst_68 {dimension_numbers = #tpu.dot_dimension_numbers<[1], [0], [0], [1], [0, 0, 1, 1], [], []>} : vector<32x128xbf16>, vector<128x128xbf16>, vector<32x128xf32> -> vector<32x128xf32>
    %80 = arith.addf %74, %79 : vector<32x128xf32>
    %cst_69 = arith.constant dense<0.000000e+00> : vector<128xf32>
    %81 = vector.multi_reduction <add>, %80, %cst_69 [0] : vector<32x128xf32> to vector<128xf32>
    %82 = vector.shape_cast %81 : vector<128xf32> to vector<1x128xf32>
    %83 = arith.mulf %80, %80 : vector<32x128xf32>
    %cst_70 = arith.constant dense<0.000000e+00> : vector<128xf32>
    %84 = vector.multi_reduction <add>, %83, %cst_70 [0] : vector<32x128xf32> to vector<128xf32>
    %85 = vector.shape_cast %84 : vector<128xf32> to vector<1x128xf32>
    %c0_71 = arith.constant 0 : index
    %c0_72 = arith.constant 0 : index
    %86 = vector.load %arg7[%c0_71, %c0_72] : memref<128x128xf32, #tpu.memory_space<vmem>>, vector<128x128xf32>
    %cst_73 = arith.constant dense<0.000000e+00> : vector<1x128xf32>
    %87 = tpu.matmul %82, %86, %cst_73 {dimension_numbers = #tpu.dot_dimension_numbers<[1], [0], [0], [1], [0, 0, 1, 1], [], []>} : vector<1x128xf32>, vector<128x128xf32>, vector<1x128xf32> -> vector<1x128xf32>
    %c0_74 = arith.constant 0 : index
    %c0_75 = arith.constant 0 : index
    %88 = vector.load %arg7[%c0_74, %c0_75] : memref<128x128xf32, #tpu.memory_space<vmem>>, vector<128x128xf32>
    %cst_76 = arith.constant dense<0.000000e+00> : vector<1x128xf32>
    %89 = tpu.matmul %85, %88, %cst_76 {dimension_numbers = #tpu.dot_dimension_numbers<[1], [0], [0], [1], [0, 0, 1, 1], [], []>} : vector<1x128xf32>, vector<128x128xf32>, vector<1x128xf32> -> vector<1x128xf32>
    %90 = arith.mulf %87, %87 : vector<1x128xf32>
    %91 = arith.subf %89, %90 : vector<1x128xf32>
    %cst_77 = arith.constant 9.99999974E-6 : f32
    %92 = vector.broadcast %cst_77 : f32 to vector<1x128xf32>
    %93 = arith.addf %91, %92 : vector<1x128xf32>
    %94 = math.rsqrt %93 : vector<1x128xf32>
    %c0_78 = arith.constant 0 : index
    %c0_79 = arith.constant 0 : index
    %95 = vector.load %arg8[%c0_78, %c0_79] : memref<1x128xf32, #tpu.memory_space<vmem>>, vector<1x128xf32>
    %96 = arith.mulf %94, %95 : vector<1x128xf32>
    %c0_80 = arith.constant 0 : index
    %c0_81 = arith.constant 0 : index
    %97 = vector.load %arg9[%c0_80, %c0_81] : memref<1x128xf32, #tpu.memory_space<vmem>>, vector<1x128xf32>
    %98 = arith.mulf %87, %96 : vector<1x128xf32>
    %99 = arith.subf %97, %98 : vector<1x128xf32>
    %100 = vector.broadcast %96 : vector<1x128xf32> to vector<32x128xf32>
    %101 = arith.mulf %80, %100 : vector<32x128xf32>
    %102 = vector.broadcast %99 : vector<1x128xf32> to vector<32x128xf32>
    %103 = arith.addf %101, %102 : vector<32x128xf32>
    %104 = arith.addf %103, %11 : vector<32x128xf32>
    %cst_82 = arith.constant 0.000000e+00 : f32
    %105 = vector.broadcast %cst_82 : f32 to vector<32x128xf32>
    %106 = arith.maximumf %104, %105 : vector<32x128xf32>
    %107 = vector.shape_cast %106 : vector<32x128xf32> to vector<2x16x128xf32>
    %c0_83 = arith.constant 0 : index
    %c1_84 = arith.constant 1 : index
    %c0_85 = arith.constant 0 : index
    %108 = vector.load %arg11[%c0_83, %c1_84, %c0_85] : memref<2x18x128xf32, #tpu.memory_space<vmem>>, vector<2x16x128xf32>
    tpu.vector_store %arg11[%c0_83, %c1_84, %c0_85], %107 {strides = array<i32>} : memref<2x18x128xf32, #tpu.memory_space<vmem>>, vector<2x16x128xf32>,
    %c0_86 = arith.constant 0 : index
    %c0_87 = arith.constant 0 : index
    %c0_88 = arith.constant 0 : index
    %109 = vector.load %arg11[%c0_86, %c0_87, %c0_88] : memref<2x18x128xf32, #tpu.memory_space<vmem>>, vector<2x18x128xf32>
    %110 = arith.truncf %109 : vector<2x18x128xf32> to vector<2x18x128xbf16>
    %cst_89 = arith.constant 0.000000e+00 : f32
    %111 = vector.broadcast %cst_89 : f32 to vector<32x128xf32>
    %112 = vector.extract_strided_slice %110 {offsets = [0, 0, 0], sizes = [2, 16, 128], strides = [1, 1, 1]} : vector<2x18x128xbf16> to vector<2x16x128xbf16>
    %113 = vector.shape_cast %112 : vector<2x16x128xbf16> to vector<32x128xbf16>
    %c0_90 = arith.constant 0 : index
    %c0_91 = arith.constant 0 : index
    %c0_92 = arith.constant 0 : index
    %114 = vector.load %arg2[%c0_90, %c0_91, %c0_92] : memref<3x128x128xbf16, #tpu.memory_space<vmem>>, vector<1x128x128xbf16>
    %115 = vector.shape_cast %114 : vector<1x128x128xbf16> to vector<128x128xbf16>
    %cst_93 = arith.constant dense<0.000000e+00> : vector<32x128xf32>
    %116 = tpu.matmul %113, %115, %cst_93 {dimension_numbers = #tpu.dot_dimension_numbers<[1], [0], [0], [1], [0, 0, 1, 1], [], []>} : vector<32x128xbf16>, vector<128x128xbf16>, vector<32x128xf32> -> vector<32x128xf32>
    %117 = arith.addf %111, %116 : vector<32x128xf32>
    %118 = vector.extract_strided_slice %110 {offsets = [0, 1, 0], sizes = [2, 16, 128], strides = [1, 1, 1]} : vector<2x18x128xbf16> to vector<2x16x128xbf16>
    %119 = vector.shape_cast %118 : vector<2x16x128xbf16> to vector<32x128xbf16>
    %c1_94 = arith.constant 1 : index
    %c0_95 = arith.constant 0 : index
    %c0_96 = arith.constant 0 : index
    %120 = vector.load %arg2[%c1_94, %c0_95, %c0_96] : memref<3x128x128xbf16, #tpu.memory_space<vmem>>, vector<1x128x128xbf16>
    %121 = vector.shape_cast %120 : vector<1x128x128xbf16> to vector<128x128xbf16>
    %cst_97 = arith.constant dense<0.000000e+00> : vector<32x128xf32>
    %122 = tpu.matmul %119, %121, %cst_97 {dimension_numbers = #tpu.dot_dimension_numbers<[1], [0], [0], [1], [0, 0, 1, 1], [], []>} : vector<32x128xbf16>, vector<128x128xbf16>, vector<32x128xf32> -> vector<32x128xf32>
    %123 = arith.addf %117, %122 : vector<32x128xf32>
    %124 = vector.extract_strided_slice %110 {offsets = [0, 2, 0], sizes = [2, 16, 128], strides = [1, 1, 1]} : vector<2x18x128xbf16> to vector<2x16x128xbf16>
    %125 = vector.shape_cast %124 : vector<2x16x128xbf16> to vector<32x128xbf16>
    %c2_98 = arith.constant 2 : index
    %c0_99 = arith.constant 0 : index
    %c0_100 = arith.constant 0 : index
    %126 = vector.load %arg2[%c2_98, %c0_99, %c0_100] : memref<3x128x128xbf16, #tpu.memory_space<vmem>>, vector<1x128x128xbf16>
    %127 = vector.shape_cast %126 : vector<1x128x128xbf16> to vector<128x128xbf16>
    %cst_101 = arith.constant dense<0.000000e+00> : vector<32x128xf32>
    %128 = tpu.matmul %125, %127, %cst_101 {dimension_numbers = #tpu.dot_dimension_numbers<[1], [0], [0], [1], [0, 0, 1, 1], [], []>} : vector<32x128xbf16>, vector<128x128xbf16>, vector<32x128xf32> -> vector<32x128xf32>
    %129 = arith.addf %123, %128 : vector<32x128xf32>
    %cst_102 = arith.constant dense<0.000000e+00> : vector<128xf32>
    %130 = vector.multi_reduction <add>, %129, %cst_102 [0] : vector<32x128xf32> to vector<128xf32>
    %131 = vector.shape_cast %130 : vector<128xf32> to vector<1x128xf32>
    %132 = arith.mulf %129, %129 : vector<32x128xf32>
    %cst_103 = arith.constant dense<0.000000e+00> : vector<128xf32>
    %133 = vector.multi_reduction <add>, %132, %cst_103 [0] : vector<32x128xf32> to vector<128xf32>
    %134 = vector.shape_cast %133 : vector<128xf32> to vector<1x128xf32>
    %c0_104 = arith.constant 0 : index
    %c0_105 = arith.constant 0 : index
    %135 = vector.load %arg3[%c0_104, %c0_105] : memref<128x128xf32, #tpu.memory_space<vmem>>, vector<128x128xf32>
    %cst_106 = arith.constant dense<0.000000e+00> : vector<1x128xf32>
    %136 = tpu.matmul %131, %135, %cst_106 {dimension_numbers = #tpu.dot_dimension_numbers<[1], [0], [0], [1], [0, 0, 1, 1], [], []>} : vector<1x128xf32>, vector<128x128xf32>, vector<1x128xf32> -> vector<1x128xf32>
    %c0_107 = arith.constant 0 : index
    %c0_108 = arith.constant 0 : index
    %137 = vector.load %arg3[%c0_107, %c0_108] : memref<128x128xf32, #tpu.memory_space<vmem>>, vector<128x128xf32>
    %cst_109 = arith.constant dense<0.000000e+00> : vector<1x128xf32>
    %138 = tpu.matmul %134, %137, %cst_109 {dimension_numbers = #tpu.dot_dimension_numbers<[1], [0], [0], [1], [0, 0, 1, 1], [], []>} : vector<1x128xf32>, vector<128x128xf32>, vector<1x128xf32> -> vector<1x128xf32>
    %139 = arith.mulf %136, %136 : vector<1x128xf32>
    %140 = arith.subf %138, %139 : vector<1x128xf32>
    %cst_110 = arith.constant 9.99999974E-6 : f32
    %141 = vector.broadcast %cst_110 : f32 to vector<1x128xf32>
    %142 = arith.addf %140, %141 : vector<1x128xf32>
    %143 = math.rsqrt %142 : vector<1x128xf32>
    %c0_111 = arith.constant 0 : index
    %c0_112 = arith.constant 0 : index
    %144 = vector.load %arg4[%c0_111, %c0_112] : memref<1x128xf32, #tpu.memory_space<vmem>>, vector<1x128xf32>
    %145 = arith.mulf %143, %144 : vector<1x128xf32>
    %c0_113 = arith.constant 0 : index
    %c0_114 = arith.constant 0 : index
    %146 = vector.load %arg5[%c0_113, %c0_114] : memref<1x128xf32, #tpu.memory_space<vmem>>, vector<1x128xf32>
    %147 = arith.mulf %136, %145 : vector<1x128xf32>
    %148 = arith.subf %146, %147 : vector<1x128xf32>
    %149 = vector.broadcast %145 : vector<1x128xf32> to vector<32x128xf32>
    %150 = arith.mulf %129, %149 : vector<32x128xf32>
    %151 = vector.broadcast %148 : vector<1x128xf32> to vector<32x128xf32>
    %152 = arith.addf %150, %151 : vector<32x128xf32>
    %cst_115 = arith.constant 0.000000e+00 : f32
    %153 = vector.broadcast %cst_115 : f32 to vector<32x128xf32>
    %154 = arith.maximumf %152, %153 : vector<32x128xf32>
    %155 = vector.shape_cast %154 : vector<32x128xf32> to vector<2x16x128xf32>
    %c0_116 = arith.constant 0 : index
    %c1_117 = arith.constant 1 : index
    %c0_118 = arith.constant 0 : index
    %156 = vector.load %arg12[%c0_116, %c1_117, %c0_118] : memref<2x18x128xf32, #tpu.memory_space<vmem>>, vector<2x16x128xf32>
    tpu.vector_store %arg12[%c0_116, %c1_117, %c0_118], %155 {strides = array<i32>} : memref<2x18x128xf32, #tpu.memory_space<vmem>>, vector<2x16x128xf32>,
    %c0_119 = arith.constant 0 : index
    %c0_120 = arith.constant 0 : index
    %c0_121 = arith.constant 0 : index
    %157 = vector.load %arg12[%c0_119, %c0_120, %c0_121] : memref<2x18x128xf32, #tpu.memory_space<vmem>>, vector<2x18x128xf32>
    %158 = arith.truncf %157 : vector<2x18x128xf32> to vector<2x18x128xbf16>
    %cst_122 = arith.constant 0.000000e+00 : f32
    %159 = vector.broadcast %cst_122 : f32 to vector<32x128xf32>
    %160 = vector.extract_strided_slice %158 {offsets = [0, 0, 0], sizes = [2, 16, 128], strides = [1, 1, 1]} : vector<2x18x128xbf16> to vector<2x16x128xbf16>
    %161 = vector.shape_cast %160 : vector<2x16x128xbf16> to vector<32x128xbf16>
    %c0_123 = arith.constant 0 : index
    %c0_124 = arith.constant 0 : index
    %c0_125 = arith.constant 0 : index
    %162 = vector.load %arg6[%c0_123, %c0_124, %c0_125] : memref<3x128x128xbf16, #tpu.memory_space<vmem>>, vector<1x128x128xbf16>
    %163 = vector.shape_cast %162 : vector<1x128x128xbf16> to vector<128x128xbf16>
    %cst_126 = arith.constant dense<0.000000e+00> : vector<32x128xf32>
    %164 = tpu.matmul %161, %163, %cst_126 {dimension_numbers = #tpu.dot_dimension_numbers<[1], [0], [0], [1], [0, 0, 1, 1], [], []>} : vector<32x128xbf16>, vector<128x128xbf16>, vector<32x128xf32> -> vector<32x128xf32>
    %165 = arith.addf %159, %164 : vector<32x128xf32>
    %166 = vector.extract_strided_slice %158 {offsets = [0, 1, 0], sizes = [2, 16, 128], strides = [1, 1, 1]} : vector<2x18x128xbf16> to vector<2x16x128xbf16>
    %167 = vector.shape_cast %166 : vector<2x16x128xbf16> to vector<32x128xbf16>
    %c1_127 = arith.constant 1 : index
    %c0_128 = arith.constant 0 : index
    %c0_129 = arith.constant 0 : index
    %168 = vector.load %arg6[%c1_127, %c0_128, %c0_129] : memref<3x128x128xbf16, #tpu.memory_space<vmem>>, vector<1x128x128xbf16>
    %169 = vector.shape_cast %168 : vector<1x128x128xbf16> to vector<128x128xbf16>
    %cst_130 = arith.constant dense<0.000000e+00> : vector<32x128xf32>
    %170 = tpu.matmul %167, %169, %cst_130 {dimension_numbers = #tpu.dot_dimension_numbers<[1], [0], [0], [1], [0, 0, 1, 1], [], []>} : vector<32x128xbf16>, vector<128x128xbf16>, vector<32x128xf32> -> vector<32x128xf32>
    %171 = arith.addf %165, %170 : vector<32x128xf32>
    %172 = vector.extract_strided_slice %158 {offsets = [0, 2, 0], sizes = [2, 16, 128], strides = [1, 1, 1]} : vector<2x18x128xbf16> to vector<2x16x128xbf16>
    %173 = vector.shape_cast %172 : vector<2x16x128xbf16> to vector<32x128xbf16>
    %c2_131 = arith.constant 2 : index
    %c0_132 = arith.constant 0 : index
    %c0_133 = arith.constant 0 : index
    %174 = vector.load %arg6[%c2_131, %c0_132, %c0_133] : memref<3x128x128xbf16, #tpu.memory_space<vmem>>, vector<1x128x128xbf16>
    %175 = vector.shape_cast %174 : vector<1x128x128xbf16> to vector<128x128xbf16>
    %cst_134 = arith.constant dense<0.000000e+00> : vector<32x128xf32>
    %176 = tpu.matmul %173, %175, %cst_134 {dimension_numbers = #tpu.dot_dimension_numbers<[1], [0], [0], [1], [0, 0, 1, 1], [], []>} : vector<32x128xbf16>, vector<128x128xbf16>, vector<32x128xf32> -> vector<32x128xf32>
    %177 = arith.addf %171, %176 : vector<32x128xf32>
    %cst_135 = arith.constant dense<0.000000e+00> : vector<128xf32>
    %178 = vector.multi_reduction <add>, %177, %cst_135 [0] : vector<32x128xf32> to vector<128xf32>
    %179 = vector.shape_cast %178 : vector<128xf32> to vector<1x128xf32>
    %180 = arith.mulf %177, %177 : vector<32x128xf32>
    %cst_136 = arith.constant dense<0.000000e+00> : vector<128xf32>
    %181 = vector.multi_reduction <add>, %180, %cst_136 [0] : vector<32x128xf32> to vector<128xf32>
    %182 = vector.shape_cast %181 : vector<128xf32> to vector<1x128xf32>
    %c0_137 = arith.constant 0 : index
    %c0_138 = arith.constant 0 : index
    %183 = vector.load %arg7[%c0_137, %c0_138] : memref<128x128xf32, #tpu.memory_space<vmem>>, vector<128x128xf32>
    %cst_139 = arith.constant dense<0.000000e+00> : vector<1x128xf32>
    %184 = tpu.matmul %179, %183, %cst_139 {dimension_numbers = #tpu.dot_dimension_numbers<[1], [0], [0], [1], [0, 0, 1, 1], [], []>} : vector<1x128xf32>, vector<128x128xf32>, vector<1x128xf32> -> vector<1x128xf32>
    %c0_140 = arith.constant 0 : index
    %c0_141 = arith.constant 0 : index
    %185 = vector.load %arg7[%c0_140, %c0_141] : memref<128x128xf32, #tpu.memory_space<vmem>>, vector<128x128xf32>
    %cst_142 = arith.constant dense<0.000000e+00> : vector<1x128xf32>
    %186 = tpu.matmul %182, %185, %cst_142 {dimension_numbers = #tpu.dot_dimension_numbers<[1], [0], [0], [1], [0, 0, 1, 1], [], []>} : vector<1x128xf32>, vector<128x128xf32>, vector<1x128xf32> -> vector<1x128xf32>
    %187 = arith.mulf %184, %184 : vector<1x128xf32>
    %188 = arith.subf %186, %187 : vector<1x128xf32>
    %cst_143 = arith.constant 9.99999974E-6 : f32
    %189 = vector.broadcast %cst_143 : f32 to vector<1x128xf32>
    %190 = arith.addf %188, %189 : vector<1x128xf32>
    %191 = math.rsqrt %190 : vector<1x128xf32>
    %c0_144 = arith.constant 0 : index
    %c0_145 = arith.constant 0 : index
    %192 = vector.load %arg8[%c0_144, %c0_145] : memref<1x128xf32, #tpu.memory_space<vmem>>, vector<1x128xf32>
    %193 = arith.mulf %191, %192 : vector<1x128xf32>
    %c0_146 = arith.constant 0 : index
    %c0_147 = arith.constant 0 : index
    %194 = vector.load %arg9[%c0_146, %c0_147] : memref<1x128xf32, #tpu.memory_space<vmem>>, vector<1x128xf32>
    %195 = arith.mulf %184, %193 : vector<1x128xf32>
    %196 = arith.subf %194, %195 : vector<1x128xf32>
    %197 = vector.broadcast %193 : vector<1x128xf32> to vector<32x128xf32>
    %198 = arith.mulf %177, %197 : vector<32x128xf32>
    %199 = vector.broadcast %196 : vector<1x128xf32> to vector<32x128xf32>
    %200 = arith.addf %198, %199 : vector<32x128xf32>
    %201 = arith.addf %200, %106 : vector<32x128xf32>
    %cst_148 = arith.constant 0.000000e+00 : f32
    %202 = vector.broadcast %cst_148 : f32 to vector<32x128xf32>
    %203 = arith.maximumf %201, %202 : vector<32x128xf32>
    %204 = vector.shape_cast %203 : vector<32x128xf32> to vector<2x16x128xf32>
    %c0_149 = arith.constant 0 : index
    %c0_150 = arith.constant 0 : index
    %c0_151 = arith.constant 0 : index
    %205 = vector.load %arg10[%c0_149, %c0_150, %c0_151] : memref<2x16x128xf32, #tpu.memory_space<vmem>>, vector<2x16x128xf32>
    tpu.vector_store %arg10[%c0_149, %c0_150, %c0_151], %204 {strides = array<i32>} : memref<2x16x128xf32, #tpu.memory_space<vmem>>, vector<2x16x128xf32>,
    return
  }
  func.func @transform_0(%arg0: i32) -> (i32, i32, i32) {
    %c0_i32 = arith.constant 0 : i32
    %c0_i32_0 = arith.constant 0 : i32
    %c0_i32_1 = arith.constant 0 : i32
    %c0_i32_2 = arith.constant 0 : i32
    return %c0_i32, %c0_i32_0, %c0_i32_1 : i32, i32, i32
  }
  func.func @transform_1(%arg0: i32) -> (i32, i32, i32) {
    %c0_i32 = arith.constant 0 : i32
    %c0_i32_0 = arith.constant 0 : i32
    %c0_i32_1 = arith.constant 0 : i32
    %c0_i32_2 = arith.constant 0 : i32
    return %c0_i32, %c0_i32_0, %c0_i32_1 : i32, i32, i32
  }
  func.func @transform_2(%arg0: i32) -> (i32, i32) {
    %c0_i32 = arith.constant 0 : i32
    %c0_i32_0 = arith.constant 0 : i32
    %c0_i32_1 = arith.constant 0 : i32
    return %c0_i32, %c0_i32_0 : i32, i32
  }
  func.func @transform_3(%arg0: i32) -> (i32, i32) {
    %c0_i32 = arith.constant 0 : i32
    %c0_i32_0 = arith.constant 0 : i32
    %c0_i32_1 = arith.constant 0 : i32
    return %c0_i32, %c0_i32_0 : i32, i32
  }
  func.func @transform_4(%arg0: i32) -> (i32, i32) {
    %c0_i32 = arith.constant 0 : i32
    %c0_i32_0 = arith.constant 0 : i32
    %c0_i32_1 = arith.constant 0 : i32
    return %c0_i32, %c0_i32_0 : i32, i32
  }
  func.func @transform_5(%arg0: i32) -> (i32, i32, i32) {
    %c0_i32 = arith.constant 0 : i32
    %c0_i32_0 = arith.constant 0 : i32
    %c0_i32_1 = arith.constant 0 : i32
    %c0_i32_2 = arith.constant 0 : i32
    return %c0_i32, %c0_i32_0, %c0_i32_1 : i32, i32, i32
  }
  func.func @transform_6(%arg0: i32) -> (i32, i32) {
    %c0_i32 = arith.constant 0 : i32
    %c0_i32_0 = arith.constant 0 : i32
    %c0_i32_1 = arith.constant 0 : i32
    return %c0_i32, %c0_i32_0 : i32, i32
  }
  func.func @transform_7(%arg0: i32) -> (i32, i32) {
    %c0_i32 = arith.constant 0 : i32
    %c0_i32_0 = arith.constant 0 : i32
    %c0_i32_1 = arith.constant 0 : i32
    return %c0_i32, %c0_i32_0 : i32, i32
  }
  func.func @transform_8(%arg0: i32) -> (i32, i32) {
    %c0_i32 = arith.constant 0 : i32
    %c0_i32_0 = arith.constant 0 : i32
    %c0_i32_1 = arith.constant 0 : i32
    return %c0_i32, %c0_i32_0 : i32, i32
  }
  func.func @transform_9(%arg0: i32) -> (i32, i32, i32) {
    %c0_i32 = arith.constant 0 : i32
    %c0_i32_0 = arith.constant 0 : i32
    %c0_i32_1 = arith.constant 0 : i32
    %c0_i32_2 = arith.constant 0 : i32
    return %c0_i32, %c0_i32_0, %c0_i32_1 : i32, i32, i32
  }
}

</mosaic_0001>

<bundles_post_ra>
// kernel: tile.23
= control target key start
LH: loop header
LB: loop body
LE: loop exit
PB: predicated region body
PF: predicated region fallthrough
CT: control target
= control target key end

     0   :  { %s28_s0 = inlined_call_operand.vmem [shape: f32[8], index: 0, kind: input, shape index: {}]   ;;  %s29_s1 = inlined_call_operand.vmem [shape: f32[16,8], index: 1, kind: output, shape index: {}]  }
   0x1   :  { %v4_v0 = vld [vmem:[%s28_s0] ss:$0 sm:$0xff] }
   0x2   :  { %5 = vst [vmem:[%s29_s1] sm:$0xff] %v4_v0  ;;  %8 = vst [vmem:[%s29_s1 + $0x8] sm:$0xff] %v4_v0 }

// kernel: tile.24
= control target key start
LH: loop header
LB: loop body
LE: loop exit
PB: predicated region body
PF: predicated region fallthrough
CT: control target
= control target key end

     0   :  { %s131_s10 = smov 120   ;;  %s132_s11 = smov 104   ;;  %vm3_vm0 = vcmask 64512   ;;  %vm9_vm1 = vcmask 1048512   ;;  %vm15_vm2 = vcmask 982912   ;;  %vm21_vm3 = vcmask 917312   ;;  %s207_s0 = inlined_call_operand.vmem [shape: f32[16,8], index: 0, kind: input, shape index: {}]   ;;  %s208_s1 = inlined_call_operand.vmem [shape: f32[1,128], index: 1, kind: output, shape index: {}]  }
   0x1   :  { %v101_v0 = vld [vmem:[%s207_s0 + $0xf] sm:$0x1]   ;;  %v103_v1 = vld [vmem:[%s207_s0 + $0xd] sm:$0x1]   ;;  %v102_v2 = vld [vmem:[%s207_s0 + $0xe] sm:$0x1]  }
   0x2   :  { %7 = vrot.lane.b32.xlu0 %v101_v0, %s131_s10  ;;  %19 = vrot.lane.b32.xlu1 %v103_v1, %s132_s11  ;;  %v104_v3 = vld [vmem:[%s207_s0 + $0xc] sm:$0x1]   ;;  %s133_s16 = smov 112   ;;  %s134_s17 = smov 96   ;;  %v105_v4 = vld [vmem:[%s207_s0 + $0xb] sm:$0x1]  }
   0x3   :  { %v106_v5 = vld [vmem:[%s207_s0 + $0xa] sm:$0x1]   ;;  %v2_v6 = vld [vmem:[%s207_s0] sm:$0x1]   ;;  %s135_s24 = smov 88   ;;  %s136_s25 = smov 80  }
   0x4   :  { %4 = vst.msk [vmem:[#allocation0] sm:$0x1] %vm3_vm0, %v2_v6   ;;  %v107_v7 = vld [vmem:[%s207_s0 + $0x9] sm:$0x1]   ;;  %v108_v8 = vld [vmem:[%s207_s0 + $0x8] sm:$0x1]  }
   0x5   :  { %s137_s30 = smov 72   ;;  %s138_s2 = smov 64   ;;  %v109_v9 = vld [vmem:[%s207_s0 + $0x7] sm:$0x1]   ;;  %v110_v10 = vld [vmem:[%s207_s0 + $0x6] sm:$0x1]  }
   0x6   :  { %13 = vrot.lane.b32.xlu0 %v102_v2, %s133_s16  ;;  %25 = vrot.lane.b32.xlu1 %v104_v3, %s134_s17  ;;  %s139_s7 = smov 56   ;;  %s140_s8 = smov 48   ;;  %v111_v11 = vld [vmem:[%s207_s0 + $0x5] sm:$0x1]   ;;  %v112_v12 = vld [vmem:[%s207_s0 + $0x4] sm:$0x1]  }
   0x7   :  { %s141_s13 = smov 40   ;;  %s142_s14 = smov 32   ;;  %v113_v13 = vld [vmem:[%s207_s0 + $0x3] sm:$0x1]   ;;  %v114_v14 = vld [vmem:[%s207_s0 + $0x2] sm:$0x1]  }
   0x8   :  { %s143_s19 = smov 24   ;;  %s144_s20 = smov 16   ;;  %v115_v15 = vld [vmem:[%s207_s0 + $0x1] sm:$0x1]   ;;  %vm27_vm4 = vcmask 851712   ;;  %vm33_vm5 = vcmask 786112  }
   0x9   :  { %s145_s0 = smov 8   ;;  %vm39_vm6 = vcmask 720512   ;;  %vm45_vm7 = vcmask 654912   ;;  %vm51_vm8 = vcmask 589312   ;;  %vm57_vm9 = vcmask 523712  }
   0xa   :  { %31 = vrot.lane.b32.xlu0 %v105_v4, %s135_s24  ;;  %37 = vrot.lane.b32.xlu1 %v106_v5, %s136_s25  ;;  %vm63_vm10 = vcmask 458112   ;;  %vm69_vm11 = vcmask 392512   ;;  %vm75_vm12 = vcmask 326912   ;;  %vm81_vm13 = vcmask 261312  }
   0xb   :  { %vm87_vm14 = vcmask 195712   ;;  %vm93_vm15 = vcmask 130112  }
   0xe   :  { %43 = vrot.lane.b32.xlu0 %v107_v7, %s137_s30  ;;  %49 = vrot.lane.b32.xlu1 %v108_v8, %s138_s2 }
  0x12   :  { %55 = vrot.lane.b32.xlu0 %v109_v9, %s139_s7  ;;  %61 = vrot.lane.b32.xlu1 %v110_v10, %s140_s8 }
  0x16   :  { %67 = vrot.lane.b32.xlu0 %v111_v11, %s141_s13  ;;  %73 = vrot.lane.b32.xlu1 %v112_v12, %s142_s14 }
  0x1a   :  { %79 = vrot.lane.b32.xlu0 %v113_v13, %s143_s19  ;;  %85 = vrot.lane.b32.xlu1 %v114_v14, %s144_s20 }
  0x1e   :  { %91 = vrot.lane.b32.xlu0 %v115_v15, %s145_s0 }
  0x74   :  { %v8_v16 = vpop.permute.xlu0 %7   ;;  %v20_v17 = vpop.permute.xlu1 %19  }
  0x75   :  { %10 = vst.msk [vmem:[#allocation0] sm:$0x1] %vm9_vm1, %v8_v16  }
  0x78   :  { %v14_v18 = vpop.permute.xlu0 %13   ;;  %v26_v19 = vpop.permute.xlu1 %25  }
  0x79   :  { %16 = vst.msk [vmem:[#allocation0] sm:$0x1] %vm15_vm2, %v14_v18  }
  0x7a   :  { %22 = vst.msk [vmem:[#allocation0] sm:$0x1] %vm21_vm3, %v20_v17  }
  0x7b   :  { %28 = vst.msk [vmem:[#allocation0] sm:$0x1] %vm27_vm4, %v26_v19  }
  0x7c   :  { %v32_v20 = vpop.permute.xlu0 %31   ;;  %v38_v21 = vpop.permute.xlu1 %37  }
  0x7d   :  { %34 = vst.msk [vmem:[#allocation0] sm:$0x1] %vm33_vm5, %v32_v20  }
  0x7e   :  { %40 = vst.msk [vmem:[#allocation0] sm:$0x1] %vm39_vm6, %v38_v21  }
  0x80   :  { %v44_v22 = vpop.permute.xlu0 %43   ;;  %v50_v23 = vpop.permute.xlu1 %49  }
  0x81   :  { %46 = vst.msk [vmem:[#allocation0] sm:$0x1] %vm45_vm7, %v44_v22  }
  0x82   :  { %52 = vst.msk [vmem:[#allocation0] sm:$0x1] %vm51_vm8, %v50_v23  }
  0x84   :  { %v56_v24 = vpop.permute.xlu0 %55   ;;  %v62_v25 = vpop.permute.xlu1 %61  }
  0x85   :  { %58 = vst.msk [vmem:[#allocation0] sm:$0x1] %vm57_vm9, %v56_v24  }
  0x86   :  { %64 = vst.msk [vmem:[#allocation0] sm:$0x1] %vm63_vm10, %v62_v25  }
  0x88   :  { %v68_v26 = vpop.permute.xlu0 %67   ;;  %v74_v27 = vpop.permute.xlu1 %73  }
  0x89   :  { %70 = vst.msk [vmem:[#allocation0] sm:$0x1] %vm69_vm11, %v68_v26  }
  0x8a   :  { %76 = vst.msk [vmem:[#allocation0] sm:$0x1] %vm75_vm12, %v74_v27  }
  0x8c   :  { %v80_v28 = vpop.permute.xlu0 %79   ;;  %v86_v29 = vpop.permute.xlu1 %85  }
  0x8d   :  { %82 = vst.msk [vmem:[#allocation0] sm:$0x1] %vm81_vm13, %v80_v28  }
  0x8e   :  { %88 = vst.msk [vmem:[#allocation0] sm:$0x1] %vm87_vm14, %v86_v29  }
  0x90   :  { %v92_v30 = vpop.permute.xlu0 %91  }
  0x91   :  { %94 = vst.msk [vmem:[#allocation0] sm:$0x1] %vm93_vm15, %v92_v30  }
  0x98   :  { %v98_v31 = vld [vmem:[#allocation0] sm:$0x1] }
  0x99   :  { %100 = vst [vmem:[%s208_s1] sm:$0x1] %v98_v31 }

// kernel: fold_basic_block_nchw.1
= control target key start
LH: loop header
LB: loop body
LE: loop exit
PB: predicated region body
PF: predicated region fallthrough
CT: control target
= control target key end

     0   :  { %v3822_v1 = vmov 0.0   ;;  %v3823_v2 = vmov 0.0|0.0   ;;  %vm79_vm0 = vsmask.f32 7424  ;;  %vm321_vm1 = vcmask 1046528   ;;  %s4696_s1 = inlined_call_operand.vmem [shape: bf16[3,128,128], index: 1, kind: input, shape index: {}]   ;;  %s4697_s0 = inlined_call_operand.vmem [shape: f32[2,16,128], index: 0, kind: input, shape index: {}, may-alias: {0,9}]   ;;  %s4698_s2 = inlined_call_operand.vmem [shape: f32[128,128], index: 2, kind: input, shape index: {}, may-alias: {2,6}]   ;;  %s4699_s5 = inlined_call_operand.vmem [shape: bf16[3,128,128], index: 5, kind: input, shape index: {}]   ;;  %s4700_s6 = inlined_call_operand.vmem [shape: f32[128,128], index: 6, kind: input, shape index: {}, may-alias: {2,6}]   ;;  %s4701_s3 = inlined_call_operand.vmem [shape: f32[1,128], index: 3, kind: input, shape index: {}]   ;;  %s4702_s4 = inlined_call_operand.vmem [shape: f32[1,128], index: 4, kind: input, shape index: {}]   ;;  %s4703_s7 = inlined_call_operand.vmem [shape: f32[1,128], index: 7, kind: input, shape index: {}]   ;;  %s4704_s8 = inlined_call_operand.vmem [shape: f32[1,128], index: 8, kind: input, shape index: {}]   ;;  %s4705_s9 = inlined_call_operand.vmem [shape: f32[2,16,128], index: 9, kind: output, shape index: {}, may-alias: {0,9}]  }
   0x1   :  { %v3714_v0 = vld [vmem:[%s4696_s1 + $0x40] sm:$0xff]   ;;  %33 = vst [vmem:[#allocation2] sm:$0x1] %v3822_v1  ;;  %35 = vst [vmem:[#allocation2 + $0x11] sm:$0x1] %v3822_v1  ;;  %3487 = vmatprep.subr.bf16.mxu1 %v3823_v2  ;;  %v3715_v3 = vld [vmem:[%s4696_s1 + $0x48] sm:$0xff]  }
   0x2   :  { %34 = vst [vmem:[#allocation2 + $0x18] sm:$0x1] %v3822_v1  ;;  %36 = vst [vmem:[#allocation2 + $0x29] sm:$0x1] %v3822_v1  ;;  %2967 = vmatprep.subr.bf16.mxu0 %v3714_v0  ;;  %v3716_v4 = vld [vmem:[%s4696_s1 + $0x50] sm:$0xff]   ;;  %v3717_v5 = vld [vmem:[%s4696_s1 + $0x58] sm:$0xff]  }
   0x3   :  { %37 = vst [vmem:[#allocation3] sm:$0x1] %v3822_v1  ;;  %38 = vst [vmem:[#allocation3 + $0x18] sm:$0x1] %v3822_v1  ;;  %2968 = vmatpush3.bf16.msra.mxu0 %v3714_v0  ;;  %v41_v6 = vld [vmem:[%s4697_s0] sm:$0xff]  ;;  %v42_v7 = vld [vmem:[%s4697_s0 + $0x8] sm:$0xff] }
   0x4   :  { %39 = vst [vmem:[#allocation3 + $0x11] sm:$0x1] %v3822_v1  ;;  %40 = vst [vmem:[#allocation3 + $0x29] sm:$0x1] %v3822_v1  ;;  %2969 = vmatprep.subr.bf16.mxu0 %v3715_v3  ;;  %v43_v8 = vld [vmem:[%s4697_s0 + $0x10] sm:$0xff]  ;;  %v44_v9 = vld [vmem:[%s4697_s0 + $0x18] sm:$0xff] }
   0x5   :  { %45 = vst [vmem:[#allocation2 + $0x1] sm:$0xff] %v41_v6  ;;  %46 = vst [vmem:[#allocation2 + $0x9] sm:$0xff] %v42_v7  ;;  %v3718_v10 = vld [vmem:[%s4696_s1 + $0x60] sm:$0xff]   ;;  %v3719_v11 = vld [vmem:[%s4696_s1 + $0x68] sm:$0xff]   ;;  %vm3824_vm2 = vmmov 0  }
   0x6   :  { %47 = vst [vmem:[#allocation2 + $0x19] sm:$0xff] %v43_v8  ;;  %48 = vst [vmem:[#allocation2 + $0x21] sm:$0xff] %v44_v9  ;;  %v3720_v24 = vld [vmem:[%s4696_s1 + $0x70] sm:$0xff]   ;;  %v3721_v33 = vld [vmem:[%s4696_s1 + $0x78] sm:$0xff]   ;;  %3059 = vmatprep.mubr.msk.f32.mxu1 %vm3824_vm2, %v3822_v1 }
   0x7   :  { %2970 = vmatpush3.bf16.msra.mxu0 %v3715_v3  ;;  %v3722_v39 = vld [vmem:[%s4696_s1] sm:$0xff]   ;;  %v471_v41 = vld [vmem:[%s4698_s2 + $0x8] sm:$0xff]  ;;  %v472_v44 = vld [vmem:[%s4698_s2 + $0x10] sm:$0xff] }
   0x8   :  { %2971 = vmatprep.subr.bf16.mxu0 %v3716_v4  ;;  %v470_v40 = vld [vmem:[%s4698_s2] sm:$0xff]  ;;  %v473_v45 = vld [vmem:[%s4698_s2 + $0x18] sm:$0xff]  ;;  %v3723_v46 = vld [vmem:[%s4696_s1 + $0x8] sm:$0xff]  }
   0x9   :  { %v3945_v43 = vpack.c.bf16 %v471_v41, %v470_v40  ;;  %v474_v48 = vld [vmem:[%s4698_s2 + $0x20] sm:$0xff]  ;;  %v475_v49 = vld [vmem:[%s4698_s2 + $0x28] sm:$0xff]  ;;  %v3965_v50 = vpack.c.bf16 %v473_v45, %v472_v44  ;;  %v3724_v51 = vld [vmem:[%s4696_s1 + $0x10] sm:$0xff]  }
   0xa   :  { %v3972_v52 = vpack.c.bf16 %v475_v49, %v474_v48  ;;  %v3725_v53 = vld [vmem:[%s4696_s1 + $0x18] sm:$0xff]   ;;  %v3726_v54 = vld [vmem:[%s4696_s1 + $0x20] sm:$0xff]   ;;  %v3727_v55 = vld [vmem:[%s4696_s1 + $0x28] sm:$0xff]  }
   0xb   :  { %2972 = vmatpush3.bf16.msra.mxu0 %v3716_v4  ;;  %3489 = vmatpush3.bf16.msra.mxu1 %v3945_v43  ;;  %v3728_v56 = vld [vmem:[%s4696_s1 + $0x30] sm:$0xff]   ;;  %v3729_v57 = vld [vmem:[%s4696_s1 + $0x38] sm:$0xff]   ;;  %v3730_v58 = vld [vmem:[%s4696_s1 + $0x80] sm:$0xff]  }
   0xc   :  { %2973 = vmatprep.subr.bf16.mxu0 %v3717_v5  ;;  %v53_v12 = vld [vmem:[#allocation2] sm:$0xff]  ;;  %v54_v13 = vld [vmem:[#allocation2 + $0x8] sm:$0xff]  ;;  %v55_v14 = vld [vmem:[#allocation2 + $0x10] sm:$0x3]  ;;  %3490 = vmatprep.subr.bf16.mxu1 %v3823_v2 }
   0xd   :  { %v3914_v15 = vpack.c.bf16 %v54_v13, %v53_v12  ;;  %v3916_v16 = vpack.c.bf16 %v55_v14, %v55_v14  ;;  %v56_v17 = vld [vmem:[#allocation2 + $0x18] sm:$0xff]  ;;  %v57_v18 = vld [vmem:[#allocation2 + $0x20] sm:$0xff]  ;;  %v58_v19 = vld [vmem:[#allocation2 + $0x28] sm:$0x3] }
   0xe   :  { %v3921_v23 = vpack.c.bf16 %v57_v18, %v56_v17  ;;  %v62_v25 = vpack.c.bf16 %v58_v19, %v58_v19  ;;  %v3731_v61 = vld [vmem:[%s4696_s1 + $0x88] sm:$0xff]   ;;  %v3732_v63 = vld [vmem:[%s4696_s1 + $0x90] sm:$0xff]   ;;  %v3733_v0 = vld [vmem:[%s4696_s1 + $0x98] sm:$0xff]  }
   0xf   :  { %2974 = vmatpush3.bf16.msra.mxu0 %v3717_v5  ;;  %v81_v20 = vshrl.u32 %v3914_v15, 16  ;;  %v83_v21 = vshll.u32 %v3914_v15, 16  ;;  %v88_v22 = vshll.u32 %v3916_v16, 16  ;;  %3492 = vmatpush3.bf16.msra.mxu1 %v3965_v50  ;;  %v322_v59 = vrot.slane %v3914_v15, 1  ;;  %v3734_v3 = vld [vmem:[%s4696_s1 + $0xa0] sm:$0xff]   ;;  %v3735_v4 = vld [vmem:[%s4696_s1 + $0xa8] sm:$0xff]  }
  0x10   :  { %2975 = vmatprep.subr.bf16.mxu0 %v3718_v10  ;;  %v95_v28 = vshll.u32 %v3921_v23, 16  ;;  %v93_v29 = vshrl.u32 %v3921_v23, 16  ;;  %v100_v32 = vshll.u32 %v62_v25, 16  ;;  %v325_v35 = vrot.slane %v3921_v23, 1  ;;  %3493 = vmatprep.subr.bf16.mxu1 %v3823_v2  ;;  %v3736_v5 = vld [vmem:[%s4696_s1 + $0xb0] sm:$0xff]   ;;  %v3737_v6 = vld [vmem:[%s4696_s1 + $0xb8] sm:$0xff]  }
  0x11   :  { %v85_v26 = vrot.slane %v83_v21, 1  ;;  %v90_v27 = vrot.slane %v88_v22, 1  ;;  %v326_v38 = vrot.slane %v62_v25, 1  ;;  %v323_v60 = vrot.slane %v3916_v16, 1  ;;  %v476_v7 = vld [vmem:[%s4698_s2 + $0x30] sm:$0xff]  ;;  %v477_v8 = vld [vmem:[%s4698_s2 + $0x38] sm:$0xff] }
  0x12   :  { %v97_v31 = vrot.slane %v95_v28, 1  ;;  %v102_v37 = vrot.slane %v100_v32, 1  ;;  %v3497_v9 = vpack.c.bf16 %v477_v8, %v476_v7  ;;  %v480_v13 = vld [vmem:[%s4698_s2 + $0x50] sm:$0xff]  ;;  %v481_v14 = vld [vmem:[%s4698_s2 + $0x58] sm:$0xff]  ;;  %v482_v16 = vld [vmem:[%s4698_s2 + $0x60] sm:$0xff] }
  0x13   :  { %2976 = vmatpush3.bf16.msra.mxu0 %v3718_v10  ;;  %v86_v30 = vor.u32 %v85_v26, %v81_v20  ;;  %v3943_v42 = vsel %vm321_vm1, %v325_v35, %v326_v38  ;;  %3495 = vmatpush3.bf16.msra.mxu1 %v3972_v52  ;;  %v324_v62 = vsel %vm321_vm1, %v322_v59, %v323_v60  ;;  %v478_v10 = vld [vmem:[%s4698_s2 + $0x40] sm:$0xff]  ;;  %v483_v17 = vld [vmem:[%s4698_s2 + $0x68] sm:$0xff]  ;;  %v484_v19 = vld [vmem:[%s4698_s2 + $0x70] sm:$0xff] }
  0x14   :  { %2977 = vmatprep.subr.bf16.mxu0 %v3719_v11  ;;  %v98_v36 = vor.u32 %v97_v31, %v93_v29  ;;  %3496 = vmatprep.subr.bf16.mxu1 %v3823_v2  ;;  %v3506_v18 = vpack.c.bf16 %v483_v17, %v482_v16  ;;  %v485_v20 = vld [vmem:[%s4698_s2 + $0x78] sm:$0xff]  ;;  %v3738_v48 = vld [vmem:[%s4699_s5 + $0x40] sm:$0xff]   ;;  %v3739_v49 = vld [vmem:[%s4699_s5 + $0x48] sm:$0xff]  }
  0x15   :  { %v91_v34 = vsel %vm79_vm0, %v86_v30, %v90_v27  ;;  %v3509_v21 = vpack.c.bf16 %v485_v20, %v484_v19  ;;  %v1076_v59 = vld [vmem:[%s4700_s6] sm:$0xff]  ;;  %v1077_v60 = vld [vmem:[%s4700_s6 + $0x8] sm:$0xff] }
  0x16   :  { %2983 = vmatprep.mubr.bf16.mxu0 %v91_v34  ;;  %v103_v47 = vsel %vm79_vm0, %v98_v36, %v102_v37  ;;  %v632_v17 = vld [vmem:[%s4702_s4] sm:$0x1] }
  0x17   :  { %2978 = vmatpush3.bf16.msra.mxu0 %v3719_v11  ;;  %3498 = vmatpush3.bf16.msra.mxu1 %v3497_v9  ;;  %v479_v11 = vld [vmem:[%s4698_s2 + $0x48] sm:$0xff] }
  0x18   :  { %2979 = vmatprep.subr.bf16.mxu0 %v3720_v24  ;;  %3499 = vmatprep.subr.bf16.mxu1 %v3823_v2  ;;  %v3500_v12 = vpack.c.bf16 %v479_v11, %v478_v10  ;;  %v635_v11 = vlaneseq }
  0x1b   :  { %2980 = vmatpush3.bf16.msra.mxu0 %v3720_v24  ;;  %3501 = vmatpush3.bf16.msra.mxu1 %v3500_v12 }
  0x1c   :  { %2981 = vmatprep.subr.bf16.mxu0 %v3721_v33  ;;  %3502 = vmatprep.subr.bf16.mxu1 %v3823_v2 }
  0x1f   :  { %2982 = vmatpush3.bf16.msra.mxu0 %v3721_v33 }
  0x20   :  { %2987 = vmatprep.subr.bf16.mxu0 %v3722_v39 }
  0x22   :  { %2984 = vmatmul.mubr.bf16.vlgmr.msra.gmra.mrb[0].mxu0 %v103_v47 }
  0x23   :  { %2988 = vmatpush3.bf16.msra.mxu0 %v3722_v39  ;;  %3003 = vmatprep.mubr.bf16.mxu0 %v3914_v15  ;;  %v3503_v15 = vpack.c.bf16 %v481_v14, %v480_v13  ;;  %v630_v13 = vld [vmem:[%s4701_s3] sm:$0x1] }
  0x24   :  { %2989 = vmatprep.subr.bf16.mxu0 %v3723_v46 }
  0x25   :  { %3504 = vmatpush3.bf16.msra.mxu1 %v3503_v15 }
  0x26   :  { %3505 = vmatprep.subr.bf16.mxu1 %v3823_v2 }
  0x27   :  { %2990 = vmatpush3.bf16.msra.mxu0 %v3723_v46 }
  0x28   :  { %2991 = vmatprep.subr.bf16.mxu0 %v3724_v51 }
  0x29   :  { %3507 = vmatpush3.bf16.msra.mxu1 %v3506_v18 }
  0x2a   :  { %3508 = vmatprep.subr.bf16.mxu1 %v3823_v2 }
  0x2b   :  { %2992 = vmatpush3.bf16.msra.mxu0 %v3724_v51  ;;  %v3741_v51 = vld [vmem:[%s4699_s5 + $0x58] sm:$0xff]  }
  0x2c   :  { %2993 = vmatprep.subr.bf16.mxu0 %v3725_v53 }
  0x2d   :  { %3510 = vmatpush3.bf16.msra.mxu1 %v3509_v21 }
  0x2e   :  { %3511 = vmatprep.subr.bf16.mxu1 %v3823_v2 }
  0x2f   :  { %2994 = vmatpush3.bf16.msra.mxu0 %v3725_v53  ;;  %v3743_v53 = vld [vmem:[%s4699_s5 + $0x68] sm:$0xff]  }
  0x30   :  { %2995 = vmatprep.subr.bf16.mxu0 %v3726_v54 }
  0x33   :  { %2996 = vmatpush3.bf16.msra.mxu0 %v3726_v54  ;;  %v3744_v54 = vld [vmem:[%s4699_s5 + $0x70] sm:$0xff]  }
  0x34   :  { %2997 = vmatprep.subr.bf16.mxu0 %v3727_v55 }
  0x37   :  { %2998 = vmatpush3.bf16.msra.mxu0 %v3727_v55  ;;  %v3745_v55 = vld [vmem:[%s4699_s5 + $0x78] sm:$0xff]  }
  0x38   :  { %2999 = vmatprep.subr.bf16.mxu0 %v3728_v56 }
  0x3b   :  { %3000 = vmatpush3.bf16.msra.mxu0 %v3728_v56  ;;  %v4120_v56 = vld [vmem:[%s4699_s5] sm:$0xff]  }
  0x3c   :  { %3001 = vmatprep.subr.bf16.mxu0 %v3729_v57 }
  0x3f   :  { %3002 = vmatpush3.bf16.msra.mxu0 %v3729_v57 }
  0x40   :  { %3007 = vmatprep.subr.bf16.mxu0 %v3730_v58 }
  0x42   :  { %3004 = vmatmul.mubr.bf16.vlgmr.msra.gmra.mrb[0].mxu0 %v3921_v23 }
  0x43   :  { %3008 = vmatpush3.bf16.msra.mxu0 %v3730_v58  ;;  %3023 = vmatprep.mubr.bf16.mxu0 %v324_v62  ;;  %v4132_v62 = vpack.c.bf16 %v1077_v60, %v1076_v59 }
  0x44   :  { %3009 = vmatprep.subr.bf16.mxu0 %v3731_v61 }
  0x47   :  { %3010 = vmatpush3.bf16.msra.mxu0 %v3731_v61  ;;  %v1078_v61 = vld [vmem:[%s4700_s6 + $0x10] sm:$0xff] }
  0x48   :  { %3011 = vmatprep.subr.bf16.mxu0 %v3732_v63 }
  0x4b   :  { %3012 = vmatpush3.bf16.msra.mxu0 %v3732_v63  ;;  %v1079_v63 = vld [vmem:[%s4700_s6 + $0x18] sm:$0xff] }
  0x4c   :  { %3013 = vmatprep.subr.bf16.mxu0 %v3733_v0 }
  0x4f   :  { %3014 = vmatpush3.bf16.msra.mxu0 %v3733_v0  ;;  %v4138_v0 = vpack.c.bf16 %v1079_v63, %v1078_v61  ;;  %v3747_v61 = vld [vmem:[%s4699_s5 + $0x8] sm:$0xff]  }
  0x50   :  { %3015 = vmatprep.subr.bf16.mxu0 %v3734_v3 }
  0x53   :  { %3016 = vmatpush3.bf16.msra.mxu0 %v3734_v3  ;;  %v1080_v3 = vld [vmem:[%s4700_s6 + $0x20] sm:$0xff] }
  0x54   :  { %3017 = vmatprep.subr.bf16.mxu0 %v3735_v4 }
  0x57   :  { %3018 = vmatpush3.bf16.msra.mxu0 %v3735_v4  ;;  %v1081_v4 = vld [vmem:[%s4700_s6 + $0x28] sm:$0xff] }
  0x58   :  { %3019 = vmatprep.subr.bf16.mxu0 %v3736_v5 }
  0x5b   :  { %3020 = vmatpush3.bf16.msra.mxu0 %v3736_v5  ;;  %v4148_v5 = vpack.c.bf16 %v1081_v4, %v1080_v3  ;;  %v3748_v3 = vld [vmem:[%s4699_s5 + $0x10] sm:$0xff]   ;;  %v3749_v4 = vld [vmem:[%s4699_s5 + $0x18] sm:$0xff]  }
  0x5c   :  { %3021 = vmatprep.subr.bf16.mxu0 %v3737_v6 }
  0x5f   :  { %3022 = vmatpush3.bf16.msra.mxu0 %v3737_v6 }
  0x60   :  { %3535 = vmatprep.subr.bf16.mxu0 %v3823_v2 }
  0x62   :  { %3024 = vmatmul.mubr.bf16.vlgmr.msra.gmra.mrb[0].mxu0 %v3943_v42 }
  0x63   :  { %3189 = vmatprep.mubr.msk.f32.mxu0 %vm3824_vm2, %v3822_v1  ;;  %3537 = vmatpush3.bf16.msra.mxu0 %v4132_v62 }
  0x64   :  { %3538 = vmatprep.subr.bf16.mxu0 %v3823_v2 }
  0x67   :  { %3540 = vmatpush3.bf16.msra.mxu0 %v4138_v0 }
  0x68   :  { %3541 = vmatprep.subr.bf16.mxu0 %v3823_v2 }
  0x6b   :  { %3543 = vmatpush3.bf16.msra.mxu0 %v4148_v5 }
  0x6c   :  { %3544 = vmatprep.subr.bf16.mxu0 %v3823_v2 }
 0x135   :  { %v4061_v22 = vpop.f32.mrb[0].mxu0 }
 0x136   :  { %v4063_v23 = vpop.f32.mrb[1].mxu0  ;;  %v459_v29 = vmul.f32 %v4061_v22, %v4061_v22 }
 0x137   :  { %v4065_v24 = vpop.f32.mrb[2].mxu0  ;;  %v457_v26 = vmul.f32 %v4063_v23, %v4063_v23 }
 0x138   :  { %v4067_v25 = vpop.f32.mrb[3].mxu0  ;;  %v460_v32 = vmul.f32 %v4065_v24, %v4065_v24 }
 0x139   :  { %v448_v27 = vadd.f32 %v4067_v25, %v4063_v23  ;;  %v458_v28 = vmul.f32 %v4067_v25, %v4067_v25 }
 0x13b   :  { %v449_v30 = vadd.f32 %v4061_v22, %v448_v27  ;;  %v461_v31 = vadd.f32 %v458_v28, %v457_v26 }
 0x13d   :  { %v450_v33 = vadd.f32 %v4065_v24, %v449_v30  ;;  %v462_v34 = vadd.f32 %v461_v31, %v459_v29 }
 0x13f   :  { %v451_v35 = vrot.slane %v450_v33, 4  ;;  %v463_v36 = vadd.f32 %v462_v34, %v460_v32 }
 0x141   :  { %v452_v37 = vadd.f32 %v451_v35, %v450_v33  ;;  %v464_v42 = vrot.slane %v463_v36, 4 }
 0x143   :  { %v453_v38 = vrot.slane %v452_v37, 2  ;;  %v465_v44 = vadd.f32 %v464_v42, %v463_v36 }
 0x145   :  { %v454_v39 = vadd.f32 %v453_v38, %v452_v37 }
 0x147   :  { %v455_v40 = vrot.slane %v454_v39, 1 }
 0x149   :  { %v456_v41 = vadd.f32 %v455_v40, %v454_v39 }
 0x14b   :  { %3060 = vmatmul.mubr.f32.vlgmr.msra.gmra.mrb[0].mxu1 %v456_v41 }
 0x14c   :  { %3513 = vmatpush3.bf16.msra.mxu1 %v3945_v43  ;;  %3094 = vmatprep.mubr.msk.f32.mxu1 %vm3824_vm2, %v3822_v1  ;;  %v466_v43 = vrot.slane %v465_v44, 2 }
 0x14d   :  { %3514 = vmatprep.subr.bf16.mxu1 %v3823_v2 }
 0x14e   :  { %v467_v45 = vadd.f32 %v466_v43, %v465_v44 }
 0x150   :  { %3516 = vmatpush3.bf16.msra.mxu1 %v3965_v50  ;;  %v468_v46 = vrot.slane %v467_v45, 1  ;;  %v3740_v50 = vld [vmem:[%s4699_s5 + $0x50] sm:$0xff]  }
 0x151   :  { %3517 = vmatprep.subr.bf16.mxu1 %v3823_v2 }
 0x152   :  { %v469_v47 = vadd.f32 %v468_v46, %v467_v45 }
 0x154   :  { %3519 = vmatpush3.bf16.msra.mxu1 %v3972_v52  ;;  %v3742_v52 = vld [vmem:[%s4699_s5 + $0x60] sm:$0xff]  }
 0x155   :  { %3520 = vmatprep.subr.bf16.mxu1 %v3823_v2 }
 0x158   :  { %3522 = vmatpush3.bf16.msra.mxu1 %v3497_v9 }
 0x159   :  { %3523 = vmatprep.subr.bf16.mxu1 %v3823_v2 }
 0x15c   :  { %3525 = vmatpush3.bf16.msra.mxu1 %v3500_v12  ;;  %v636_v12 = vshrl.u32 %v635_v11, 7 }
 0x15d   :  { %3526 = vmatprep.subr.bf16.mxu1 %v3823_v2 }
 0x15e   :  { %v4156_v14 = vsub.s32 0, %v636_v12  ;;  %v3755_v12 = vld [vmem:[%s4699_s5 + $0x88] sm:$0xff]  }
 0x160   :  { %3528 = vmatpush3.bf16.msra.mxu1 %v3503_v15 }
 0x161   :  { %3529 = vmatprep.subr.bf16.mxu1 %v3823_v2 }
 0x164   :  { %3531 = vmatpush3.bf16.msra.mxu1 %v3506_v18 }
 0x165   :  { %3532 = vmatprep.subr.bf16.mxu1 %v3823_v2 }
 0x168   :  { %3534 = vmatpush3.bf16.msra.mxu1 %v3509_v21 }
 0x169   :  { %3097 = vmatprep.subr.bf16.mxu1 %v3738_v48 }
 0x16b   :  { %3095 = vmatmul.mubr.f32.vlgmr.msra.gmra.mrb[2].mxu1 %v469_v47 }
 0x16c   :  { %3098 = vmatpush3.bf16.msra.mxu1 %v3738_v48 }
 0x16d   :  { %3099 = vmatprep.subr.bf16.mxu1 %v3739_v49 }
 0x170   :  { %3100 = vmatpush3.bf16.msra.mxu1 %v3739_v49 }
 0x171   :  { %3101 = vmatprep.subr.bf16.mxu1 %v3740_v50 }
 0x174   :  { %3102 = vmatpush3.bf16.msra.mxu1 %v3740_v50 }
 0x175   :  { %3103 = vmatprep.subr.bf16.mxu1 %v3741_v51 }
 0x178   :  { %3104 = vmatpush3.bf16.msra.mxu1 %v3741_v51 }
 0x179   :  { %3105 = vmatprep.subr.bf16.mxu1 %v3742_v52 }
 0x17c   :  { %3106 = vmatpush3.bf16.msra.mxu1 %v3742_v52 }
 0x17d   :  { %3107 = vmatprep.subr.bf16.mxu1 %v3743_v53 }
 0x180   :  { %3108 = vmatpush3.bf16.msra.mxu1 %v3743_v53 }
 0x181   :  { %3109 = vmatprep.subr.bf16.mxu1 %v3744_v54 }
 0x184   :  { %3110 = vmatpush3.bf16.msra.mxu1 %v3744_v54 }
 0x185   :  { %3111 = vmatprep.subr.bf16.mxu1 %v3745_v55 }
 0x188   :  { %3112 = vmatpush3.bf16.msra.mxu1 %v3745_v55 }
 0x189   :  { %3117 = vmatprep.subr.bf16.mxu1 %v4120_v56 }
 0x21e   :  { %v552_v57 = vpop.f32.mrb[0].mxu1 }
 0x21f   :  { %v3061_v58 = vpop.f32.mrb[1].mxu1  ;;  %v626_v6 = vmul.f32 %v552_v57, %v552_v57 }
 0x23e   :  { %v622_v7 = vpop.f32.mrb[2].mxu1 }
 0x23f   :  { %v627_v8 = vsub.f32 %v622_v7, %v626_v6  ;;  %v3096_v9 = vpop.f32.mrb[3].mxu1  ;;  %v3750_v6 = vld [vmem:[%s4699_s5 + $0x20] sm:$0xff]   ;;  %v3752_v7 = vld [vmem:[%s4699_s5 + $0x30] sm:$0xff]  }
 0x240   :  { %v3754_v9 = vld [vmem:[%s4699_s5 + $0x80] sm:$0xff]  }
 0x241   :  { %v628_v10 = vadd.f32 1e-05, %v627_v8  ;;  %v3753_v8 = vld [vmem:[%s4699_s5 + $0x38] sm:$0xff]  }
 0x243   :  { %3810 = vrsqrt.f32 %v628_v10 }
 0x24d   :  { %v3811_v15 = vpop.eup %3810 }
 0x24e   :  { %v631_v16 = vmul.f32 %v3811_v15, %v630_v13  ;;  %v3756_v15 = vld [vmem:[%s4699_s5 + $0x90] sm:$0xff]  }
 0x250   :  { %v633_v18 = vmul.f32 %v631_v16, %v552_v57  ;;  %v638_v19 = vrot.slane %v631_v16, %v4156_v14  ;;  %v3757_v16 = vld [vmem:[%s4699_s5 + $0x98] sm:$0xff]  }
 0x252   :  { %v634_v20 = vsub.f32 %v632_v17, %v633_v18  ;;  %v639_v21 = vmul.f32 %v638_v19, %v4063_v23  ;;  %v640_v26 = vmul.f32 %v638_v19, %v4067_v25  ;;  %v641_v27 = vmul.f32 %v4061_v22, %v638_v19  ;;  %v3758_v17 = vld [vmem:[%s4699_s5 + $0xa0] sm:$0xff]   ;;  %v3759_v18 = vld [vmem:[%s4699_s5 + $0xa8] sm:$0xff]  }
 0x253   :  { %v642_v28 = vmul.f32 %v4065_v24, %v638_v19  ;;  %v3760_v19 = vld [vmem:[%s4699_s5 + $0xb0] sm:$0xff]  }
 0x254   :  { %v647_v29 = vrot.slane %v634_v20, %v4156_v14  ;;  %v3761_v20 = vld [vmem:[%s4699_s5 + $0xb8] sm:$0xff]  }
 0x256   :  { %v649_v30 = vadd.f32 %v647_v29, %v639_v21  ;;  %v650_v31 = vadd.f32 %v647_v29, %v640_v26  ;;  %v651_v32 = vadd.f32 %v647_v29, %v641_v27  ;;  %v652_v33 = vadd.f32 %v647_v29, %v642_v28  ;;  %v1082_v21 = vld [vmem:[%s4700_s6 + $0x30] sm:$0xff]  ;;  %v1083_v26 = vld [vmem:[%s4700_s6 + $0x38] sm:$0xff]  ;;  %v1084_v28 = vld [vmem:[%s4700_s6 + $0x40] sm:$0xff] }
 0x257   :  { %v3545_v27 = vpack.c.bf16 %v1083_v26, %v1082_v21  ;;  %v1085_v29 = vld [vmem:[%s4700_s6 + $0x48] sm:$0xff] }
 0x258   :  { %v653_v34 = vmax.f32 %v649_v30, 0.0  ;;  %v654_v35 = vmax.f32 %v650_v31, 0.0  ;;  %v655_v36 = vmax.f32 %v651_v32, 0.0  ;;  %v656_v37 = vmax.f32 %v652_v33, 0.0  ;;  %v1086_v31 = vld [vmem:[%s4700_s6 + $0x50] sm:$0xff]  ;;  %v1087_v32 = vld [vmem:[%s4700_s6 + $0x58] sm:$0xff] }
 0x259   :  { %3546 = vmatpush3.bf16.msra.mxu0 %v3545_v27  ;;  %v3548_v30 = vpack.c.bf16 %v1085_v29, %v1084_v28  ;;  %v3551_v33 = vpack.c.bf16 %v1087_v32, %v1086_v31 }
 0x25a   :  { %657 = vst [vmem:[#allocation3 + $0x1] sm:$0xff] %v653_v34  ;;  %658 = vst [vmem:[#allocation3 + $0x9] sm:$0xff] %v654_v35  ;;  %3547 = vmatprep.subr.bf16.mxu0 %v3823_v2  ;;  %v1088_v34 = vld [vmem:[%s4700_s6 + $0x60] sm:$0xff]  ;;  %v1089_v35 = vld [vmem:[%s4700_s6 + $0x68] sm:$0xff] }
 0x25b   :  { %659 = vst [vmem:[#allocation3 + $0x19] sm:$0xff] %v655_v36  ;;  %660 = vst [vmem:[#allocation3 + $0x21] sm:$0xff] %v656_v37  ;;  %v1090_v36 = vld [vmem:[%s4700_s6 + $0x70] sm:$0xff]  ;;  %v3554_v37 = vpack.c.bf16 %v1089_v35, %v1088_v34 }
 0x25d   :  { %3549 = vmatpush3.bf16.msra.mxu0 %v3548_v30 }
 0x25e   :  { %3550 = vmatprep.subr.bf16.mxu0 %v3823_v2 }
 0x261   :  { %v661_v23 = vld [vmem:[#allocation3] sm:$0xff]  ;;  %v662_v25 = vld [vmem:[#allocation3 + $0x8] sm:$0xff]  ;;  %v663_v38 = vld [vmem:[#allocation3 + $0x10] sm:$0x3]  ;;  %3552 = vmatpush3.bf16.msra.mxu0 %v3551_v33 }
 0x262   :  { %v667_v22 = vpack.c.bf16 %v662_v25, %v661_v23  ;;  %v668_v39 = vpack.c.bf16 %v663_v38, %v663_v38  ;;  %v664_v24 = vld [vmem:[#allocation3 + $0x18] sm:$0xff]  ;;  %v665_v40 = vld [vmem:[#allocation3 + $0x20] sm:$0xff]  ;;  %v666_v41 = vld [vmem:[#allocation3 + $0x28] sm:$0x3]  ;;  %3553 = vmatprep.subr.bf16.mxu0 %v3823_v2 }
 0x263   :  { %v669_v42 = vpack.c.bf16 %v665_v40, %v664_v24  ;;  %v670_v44 = vpack.c.bf16 %v666_v41, %v666_v41  ;;  %v1091_v23 = vld [vmem:[%s4700_s6 + $0x78] sm:$0xff] }
 0x264   :  { %v690_v43 = vshll.u32 %v667_v22, 16  ;;  %v695_v45 = vshll.u32 %v668_v39, 16  ;;  %v688_v48 = vshrl.u32 %v667_v22, 16  ;;  %v928_v10 = vrot.slane %v667_v22, 1 }
 0x265   :  { %v702_v46 = vshll.u32 %v669_v42, 16  ;;  %v707_v47 = vshll.u32 %v670_v44, 16  ;;  %v931_v50 = vrot.slane %v669_v42, 1  ;;  %v932_v51 = vrot.slane %v670_v44, 1  ;;  %3555 = vmatpush3.bf16.msra.mxu0 %v3554_v37 }
 0x266   :  { %v692_v49 = vrot.slane %v690_v43, 1  ;;  %v700_v52 = vshrl.u32 %v669_v42, 16  ;;  %v697_v55 = vrot.slane %v695_v45, 1  ;;  %v929_v11 = vrot.slane %v668_v39, 1  ;;  %3556 = vmatprep.subr.bf16.mxu0 %v3823_v2 }
 0x267   :  { %v704_v53 = vrot.slane %v702_v46, 1  ;;  %v933_v57 = vsel %vm321_vm1, %v931_v50, %v932_v51  ;;  %v709_v59 = vrot.slane %v707_v47, 1  ;;  %v3557_v25 = vpack.c.bf16 %v1091_v23, %v1090_v36 }
 0x268   :  { %v693_v54 = vor.u32 %v692_v49, %v688_v48  ;;  %v930_v13 = vsel %vm321_vm1, %v928_v10, %v929_v11  ;;  %v1684_v11 = vld [vmem:[%s4698_s2] sm:$0xff] }
 0x269   :  { %v705_v58 = vor.u32 %v704_v53, %v700_v52  ;;  %3558 = vmatpush3.bf16.msra.mxu0 %v3557_v25 }
 0x26a   :  { %v698_v60 = vsel %vm79_vm0, %v693_v54, %v697_v55  ;;  %3559 = vmatprep.subr.bf16.mxu0 %v3823_v2 }
 0x26b   :  { %3113 = vmatprep.mubr.bf16.mxu1 %v698_v60  ;;  %v710_v63 = vsel %vm79_vm0, %v705_v58, %v709_v59  ;;  %v3762_v60 = vld [vmem:[%s4696_s1 + $0x40] sm:$0xff]  }
 0x26c   :  { %3114 = vmatmul.mubr.bf16.vlgmr.msra.gmra.mrb[4].mxu1 %v710_v63  ;;  %v3764_v63 = vld [vmem:[%s4696_s1 + $0x50] sm:$0xff]  }
 0x26d   :  { %3118 = vmatpush3.bf16.msra.mxu1 %v4120_v56  ;;  %3133 = vmatprep.mubr.bf16.mxu1 %v667_v22  ;;  %v3751_v56 = vld [vmem:[%s4699_s5 + $0x28] sm:$0xff]  }
 0x26e   :  { %3119 = vmatprep.subr.bf16.mxu1 %v3747_v61 }
 0x271   :  { %3120 = vmatpush3.bf16.msra.mxu1 %v3747_v61  ;;  %v3763_v61 = vld [vmem:[%s4696_s1 + $0x48] sm:$0xff]  }
 0x272   :  { %3121 = vmatprep.subr.bf16.mxu1 %v3748_v3 }
 0x275   :  { %3122 = vmatpush3.bf16.msra.mxu1 %v3748_v3  ;;  %v3765_v3 = vld [vmem:[%s4696_s1 + $0x58] sm:$0xff]  }
 0x276   :  { %3123 = vmatprep.subr.bf16.mxu1 %v3749_v4 }
 0x279   :  { %3124 = vmatpush3.bf16.msra.mxu1 %v3749_v4  ;;  %v3766_v4 = vld [vmem:[%s4696_s1 + $0x60] sm:$0xff]  }
 0x27a   :  { %3125 = vmatprep.subr.bf16.mxu1 %v3750_v6 }
 0x27d   :  { %3126 = vmatpush3.bf16.msra.mxu1 %v3750_v6  ;;  %v3767_v6 = vld [vmem:[%s4696_s1 + $0x68] sm:$0xff]  }
 0x27e   :  { %3127 = vmatprep.subr.bf16.mxu1 %v3751_v56 }
 0x281   :  { %3128 = vmatpush3.bf16.msra.mxu1 %v3751_v56  ;;  %v3768_v56 = vld [vmem:[%s4696_s1 + $0x70] sm:$0xff]  }
 0x282   :  { %3129 = vmatprep.subr.bf16.mxu1 %v3752_v7 }
 0x285   :  { %3130 = vmatpush3.bf16.msra.mxu1 %v3752_v7  ;;  %v3769_v7 = vld [vmem:[%s4696_s1 + $0x78] sm:$0xff]  }
 0x286   :  { %3131 = vmatprep.subr.bf16.mxu1 %v3753_v8 }
 0x289   :  { %3132 = vmatpush3.bf16.msra.mxu1 %v3753_v8  ;;  %v4314_v8 = vld [vmem:[%s4696_s1] sm:$0xff]  }
 0x28a   :  { %3137 = vmatprep.subr.bf16.mxu1 %v3754_v9 }
 0x28c   :  { %3134 = vmatmul.mubr.bf16.vlgmr.msra.gmra.mrb[4].mxu1 %v669_v42 }
 0x28d   :  { %3138 = vmatpush3.bf16.msra.mxu1 %v3754_v9  ;;  %3153 = vmatprep.mubr.bf16.mxu1 %v930_v13  ;;  %v1686_v13 = vld [vmem:[%s4698_s2 + $0x10] sm:$0xff] }
 0x28e   :  { %3139 = vmatprep.subr.bf16.mxu1 %v3755_v12 }
 0x291   :  { %3140 = vmatpush3.bf16.msra.mxu1 %v3755_v12  ;;  %v1685_v12 = vld [vmem:[%s4698_s2 + $0x8] sm:$0xff] }
 0x292   :  { %3141 = vmatprep.subr.bf16.mxu1 %v3756_v15 }
 0x295   :  { %3142 = vmatpush3.bf16.msra.mxu1 %v3756_v15  ;;  %v4326_v15 = vpack.c.bf16 %v1685_v12, %v1684_v11 }
 0x296   :  { %3143 = vmatprep.subr.bf16.mxu1 %v3757_v16 }
 0x299   :  { %3144 = vmatpush3.bf16.msra.mxu1 %v3757_v16  ;;  %v1687_v16 = vld [vmem:[%s4698_s2 + $0x18] sm:$0xff] }
 0x29a   :  { %3145 = vmatprep.subr.bf16.mxu1 %v3758_v17 }
 0x29d   :  { %3146 = vmatpush3.bf16.msra.mxu1 %v3758_v17  ;;  %v4332_v17 = vpack.c.bf16 %v1687_v16, %v1686_v13 }
 0x29e   :  { %3147 = vmatprep.subr.bf16.mxu1 %v3759_v18 }
 0x2a1   :  { %3148 = vmatpush3.bf16.msra.mxu1 %v3759_v18  ;;  %v1688_v18 = vld [vmem:[%s4698_s2 + $0x20] sm:$0xff] }
 0x2a2   :  { %3149 = vmatprep.subr.bf16.mxu1 %v3760_v19 }
 0x2a5   :  { %3150 = vmatpush3.bf16.msra.mxu1 %v3760_v19  ;;  %v1689_v19 = vld [vmem:[%s4698_s2 + $0x28] sm:$0xff] }
 0x2a6   :  { %3151 = vmatprep.subr.bf16.mxu1 %v3761_v20 }
 0x2a9   :  { %3152 = vmatpush3.bf16.msra.mxu1 %v3761_v20  ;;  %v4342_v20 = vpack.c.bf16 %v1689_v19, %v1688_v18 }
 0x2aa   :  { %3583 = vmatprep.subr.bf16.mxu1 %v3823_v2 }
 0x2ac   :  { %3154 = vmatmul.mubr.bf16.vlgmr.msra.gmra.mrb[4].mxu1 %v933_v57 }
 0x2ad   :  { %3319 = vmatprep.mubr.msk.f32.mxu1 %vm3824_vm2, %v3822_v1  ;;  %3585 = vmatpush3.bf16.msra.mxu1 %v4326_v15 }
 0x2ae   :  { %3586 = vmatprep.subr.bf16.mxu1 %v3823_v2 }
 0x2b1   :  { %3588 = vmatpush3.bf16.msra.mxu1 %v4332_v17 }
 0x2b2   :  { %3589 = vmatprep.subr.bf16.mxu1 %v3823_v2 }
 0x2b5   :  { %3591 = vmatpush3.bf16.msra.mxu1 %v4342_v20 }
 0x2b6   :  { %3592 = vmatprep.subr.bf16.mxu1 %v3823_v2 }
 0x37f   :  { %v4255_v38 = vpop.f32.mrb[4].mxu1 }
 0x380   :  { %v4257_v22 = vpop.f32.mrb[5].mxu1  ;;  %v1065_v44 = vmul.f32 %v4255_v38, %v4255_v38 }
 0x381   :  { %v4259_v39 = vpop.f32.mrb[6].mxu1  ;;  %v1063_v40 = vmul.f32 %v4257_v22, %v4257_v22 }
 0x382   :  { %v4261_v24 = vpop.f32.mrb[7].mxu1  ;;  %v1066_v46 = vmul.f32 %v4259_v39, %v4259_v39 }
 0x383   :  { %v1054_v41 = vadd.f32 %v4261_v24, %v4257_v22  ;;  %v1064_v42 = vmul.f32 %v4261_v24, %v4261_v24 }
 0x385   :  { %v1055_v43 = vadd.f32 %v4255_v38, %v1054_v41  ;;  %v1067_v45 = vadd.f32 %v1064_v42, %v1063_v40 }
 0x387   :  { %v1056_v47 = vadd.f32 %v4259_v39, %v1055_v43  ;;  %v1068_v48 = vadd.f32 %v1067_v45, %v1065_v44 }
 0x389   :  { %v1057_v49 = vrot.slane %v1056_v47, 4  ;;  %v1069_v50 = vadd.f32 %v1068_v48, %v1066_v46  ;;  %v3818_v46 = vld [vmem:[#allocation2 + $0x1] sm:$0xff]  ;;  %v3819_v48 = vld [vmem:[#allocation2 + $0x9] sm:$0xff] }
 0x38b   :  { %v1058_v51 = vadd.f32 %v1057_v49, %v1056_v47  ;;  %v1070_v57 = vrot.slane %v1069_v50, 4 }
 0x38d   :  { %v1059_v52 = vrot.slane %v1058_v51, 2  ;;  %v1071_v58 = vadd.f32 %v1070_v57, %v1069_v50  ;;  %v3820_v50 = vld [vmem:[#allocation2 + $0x19] sm:$0xff] }
 0x38f   :  { %v1060_v53 = vadd.f32 %v1059_v52, %v1058_v51 }
 0x391   :  { %v1061_v54 = vrot.slane %v1060_v53, 1 }
 0x393   :  { %v1062_v55 = vadd.f32 %v1061_v54, %v1060_v53 }
 0x395   :  { %3190 = vmatmul.mubr.f32.vlgmr.msra.gmra.mrb[4].mxu0 %v1062_v55 }
 0x396   :  { %3561 = vmatpush3.bf16.msra.mxu0 %v4132_v62  ;;  %3224 = vmatprep.mubr.msk.f32.mxu0 %vm3824_vm2, %v3822_v1  ;;  %v1072_v62 = vrot.slane %v1071_v58, 2 }
 0x397   :  { %3562 = vmatprep.subr.bf16.mxu0 %v3823_v2 }
 0x398   :  { %v1073_v59 = vadd.f32 %v1072_v62, %v1071_v58 }
 0x39a   :  { %3564 = vmatpush3.bf16.msra.mxu0 %v4138_v0  ;;  %v1074_v0 = vrot.slane %v1073_v59, 1 }
 0x39b   :  { %3565 = vmatprep.subr.bf16.mxu0 %v3823_v2 }
 0x39e   :  { %3567 = vmatpush3.bf16.msra.mxu0 %v4148_v5  ;;  %v1075_v5 = vadd.f32 %v1074_v0, %v1073_v59 }
 0x39f   :  { %3568 = vmatprep.subr.bf16.mxu0 %v3823_v2 }
 0x3a2   :  { %3570 = vmatpush3.bf16.msra.mxu0 %v3545_v27 }
 0x3a3   :  { %3571 = vmatprep.subr.bf16.mxu0 %v3823_v2 }
 0x3a6   :  { %3573 = vmatpush3.bf16.msra.mxu0 %v3548_v30  ;;  %v1236_v30 = vld [vmem:[%s4703_s7] sm:$0x1] }
 0x3a7   :  { %3574 = vmatprep.subr.bf16.mxu0 %v3823_v2 }
 0x3aa   :  { %3576 = vmatpush3.bf16.msra.mxu0 %v3551_v33  ;;  %v1238_v33 = vld [vmem:[%s4704_s8] sm:$0x1] }
 0x3ab   :  { %3577 = vmatprep.subr.bf16.mxu0 %v3823_v2 }
 0x3ae   :  { %3579 = vmatpush3.bf16.msra.mxu0 %v3554_v37 }
 0x3af   :  { %3580 = vmatprep.subr.bf16.mxu0 %v3823_v2 }
 0x3b2   :  { %3582 = vmatpush3.bf16.msra.mxu0 %v3557_v25 }
 0x3b3   :  { %3227 = vmatprep.subr.bf16.mxu0 %v3762_v60 }
 0x3b5   :  { %3225 = vmatmul.mubr.f32.vlgmr.msra.gmra.mrb[6].mxu0 %v1075_v5 }
 0x3b6   :  { %3228 = vmatpush3.bf16.msra.mxu0 %v3762_v60 }
 0x3b7   :  { %3229 = vmatprep.subr.bf16.mxu0 %v3763_v61 }
 0x3ba   :  { %3230 = vmatpush3.bf16.msra.mxu0 %v3763_v61 }
 0x3bb   :  { %3231 = vmatprep.subr.bf16.mxu0 %v3764_v63 }
 0x3be   :  { %3232 = vmatpush3.bf16.msra.mxu0 %v3764_v63 }
 0x3bf   :  { %3233 = vmatprep.subr.bf16.mxu0 %v3765_v3 }
 0x3c2   :  { %3234 = vmatpush3.bf16.msra.mxu0 %v3765_v3 }
 0x3c3   :  { %3235 = vmatprep.subr.bf16.mxu0 %v3766_v4 }
 0x3c6   :  { %3236 = vmatpush3.bf16.msra.mxu0 %v3766_v4 }
 0x3c7   :  { %3237 = vmatprep.subr.bf16.mxu0 %v3767_v6 }
 0x3ca   :  { %3238 = vmatpush3.bf16.msra.mxu0 %v3767_v6 }
 0x3cb   :  { %3239 = vmatprep.subr.bf16.mxu0 %v3768_v56 }
 0x3ce   :  { %3240 = vmatpush3.bf16.msra.mxu0 %v3768_v56 }
 0x3cf   :  { %3241 = vmatprep.subr.bf16.mxu0 %v3769_v7 }
 0x3d2   :  { %3242 = vmatpush3.bf16.msra.mxu0 %v3769_v7 }
 0x3d3   :  { %3247 = vmatprep.subr.bf16.mxu0 %v4314_v8 }
 0x468   :  { %v1158_v9 = vpop.f32.mrb[4].mxu0 }
 0x469   :  { %v3191_v10 = vpop.f32.mrb[5].mxu0  ;;  %v1232_v21 = vmul.f32 %v1158_v9, %v1158_v9 }
 0x488   :  { %v1228_v26 = vpop.f32.mrb[6].mxu0 }
 0x489   :  { %v1233_v27 = vsub.f32 %v1228_v26, %v1232_v21  ;;  %v3226_v28 = vpop.f32.mrb[7].mxu0 }
 0x48b   :  { %v1234_v29 = vadd.f32 1e-05, %v1233_v27  ;;  %v3771_v27 = vld [vmem:[%s4696_s1 + $0x8] sm:$0xff]  }
 0x48d   :  { %3812 = vrsqrt.f32 %v1234_v29  ;;  %v3772_v29 = vld [vmem:[%s4696_s1 + $0x10] sm:$0xff]  }
 0x497   :  { %v3813_v31 = vpop.eup %3812 }
 0x498   :  { %v1237_v32 = vmul.f32 %v3813_v31, %v1236_v30  ;;  %v3773_v30 = vld [vmem:[%s4696_s1 + $0x18] sm:$0xff]   ;;  %v3774_v31 = vld [vmem:[%s4696_s1 + $0x20] sm:$0xff]  }
 0x49a   :  { %v1239_v34 = vmul.f32 %v1237_v32, %v1158_v9  ;;  %v1244_v35 = vrot.slane %v1237_v32, %v4156_v14  ;;  %v3776_v32 = vld [vmem:[%s4696_s1 + $0x30] sm:$0xff]  }
 0x49c   :  { %v1240_v36 = vsub.f32 %v1238_v33, %v1239_v34  ;;  %v1245_v37 = vmul.f32 %v1244_v35, %v4257_v22  ;;  %v1246_v23 = vmul.f32 %v1244_v35, %v4261_v24  ;;  %v1247_v25 = vmul.f32 %v4255_v38, %v1244_v35  ;;  %v3821_v24 = vld [vmem:[#allocation2 + $0x21] sm:$0xff]  ;;  %v3777_v33 = vld [vmem:[%s4696_s1 + $0x38] sm:$0xff]  }
 0x49d   :  { %v1248_v40 = vmul.f32 %v4259_v39, %v1244_v35  ;;  %v3778_v34 = vld [vmem:[%s4696_s1 + $0x80] sm:$0xff]  }
 0x49e   :  { %v1253_v41 = vrot.slane %v1240_v36, %v4156_v14 }
 0x4a0   :  { %v1255_v42 = vadd.f32 %v1253_v41, %v1245_v37  ;;  %v1256_v44 = vadd.f32 %v1253_v41, %v1246_v23  ;;  %v1257_v43 = vadd.f32 %v1253_v41, %v1247_v25  ;;  %v1258_v45 = vadd.f32 %v1253_v41, %v1248_v40  ;;  %v3779_v37 = vld [vmem:[%s4696_s1 + $0x88] sm:$0xff]   ;;  %v3780_v25 = vld [vmem:[%s4696_s1 + $0x90] sm:$0xff]   ;;  %v3781_v40 = vld [vmem:[%s4696_s1 + $0x98] sm:$0xff]  }
 0x4a1   :  { %v3782_v41 = vld [vmem:[%s4696_s1 + $0xa0] sm:$0xff]  }
 0x4a2   :  { %v4359_v47 = vadd.f32 %v3818_v46, %v1255_v42  ;;  %v4361_v49 = vadd.f32 %v3819_v48, %v1256_v44  ;;  %v4363_v22 = vadd.f32 %v3820_v50, %v1257_v43  ;;  %v4365_v51 = vadd.f32 %v3821_v24, %v1258_v45  ;;  %v3783_v42 = vld [vmem:[%s4696_s1 + $0xa8] sm:$0xff]   ;;  %v3784_v44 = vld [vmem:[%s4696_s1 + $0xb0] sm:$0xff]   ;;  %v3785_v43 = vld [vmem:[%s4696_s1 + $0xb8] sm:$0xff]  }
 0x4a3   :  { %v1690_v45 = vld [vmem:[%s4698_s2 + $0x30] sm:$0xff]  ;;  %v1691_v46 = vld [vmem:[%s4698_s2 + $0x38] sm:$0xff]  ;;  %v1692_v50 = vld [vmem:[%s4698_s2 + $0x40] sm:$0xff] }
 0x4a4   :  { %v1263_v38 = vmax.f32 %v4359_v47, 0.0  ;;  %v1264_v39 = vmax.f32 %v4361_v49, 0.0  ;;  %v1265_v52 = vmax.f32 %v4363_v22, 0.0  ;;  %v1266_v53 = vmax.f32 %v4365_v51, 0.0  ;;  %v1693_v24 = vld [vmem:[%s4698_s2 + $0x48] sm:$0xff] }
 0x4a5   :  { %v3593_v48 = vpack.c.bf16 %v1691_v46, %v1690_v45  ;;  %v2289_v45 = vld [vmem:[%s4700_s6 + $0x8] sm:$0xff]  ;;  %v2290_v46 = vld [vmem:[%s4700_s6 + $0x10] sm:$0xff] }
 0x4a6   :  { %1267 = vst [vmem:[#allocation2 + $0x1] sm:$0xff] %v1263_v38  ;;  %1268 = vst [vmem:[#allocation2 + $0x9] sm:$0xff] %v1264_v39 }
 0x4a7   :  { %1269 = vst [vmem:[#allocation2 + $0x19] sm:$0xff] %v1265_v52  ;;  %1270 = vst [vmem:[#allocation2 + $0x21] sm:$0xff] %v1266_v53  ;;  %3594 = vmatpush3.bf16.msra.mxu1 %v3593_v48 }
 0x4a8   :  { %3595 = vmatprep.subr.bf16.mxu1 %v3823_v2 }
 0x4ad   :  { %v1271_v54 = vld [vmem:[#allocation2] sm:$0xff]  ;;  %v1272_v55 = vld [vmem:[#allocation2 + $0x8] sm:$0xff]  ;;  %v1273_v57 = vld [vmem:[#allocation2 + $0x10] sm:$0x3] }
 0x4ae   :  { %v1277_v58 = vpack.c.bf16 %v1272_v55, %v1271_v54  ;;  %v1278_v62 = vpack.c.bf16 %v1273_v57, %v1273_v57  ;;  %v1274_v59 = vld [vmem:[#allocation2 + $0x18] sm:$0xff]  ;;  %v1275_v0 = vld [vmem:[#allocation2 + $0x20] sm:$0xff]  ;;  %v1276_v5 = vld [vmem:[#allocation2 + $0x28] sm:$0x3]  ;;  %v3596_v54 = vpack.c.bf16 %v1693_v24, %v1692_v50 }
 0x4af   :  { %v1279_v60 = vpack.c.bf16 %v1275_v0, %v1274_v59  ;;  %v1280_v61 = vpack.c.bf16 %v1276_v5, %v1276_v5  ;;  %v1694_v55 = vld [vmem:[%s4698_s2 + $0x50] sm:$0xff]  ;;  %v1695_v57 = vld [vmem:[%s4698_s2 + $0x58] sm:$0xff]  ;;  %v1697_v59 = vld [vmem:[%s4698_s2 + $0x68] sm:$0xff] }
 0x4b0   :  { %v1300_v63 = vshll.u32 %v1277_v58, 16  ;;  %v1305_v3 = vshll.u32 %v1278_v62, 16  ;;  %v1298_v56 = vshrl.u32 %v1277_v58, 16  ;;  %v1537_v35 = vrot.slane %v1277_v58, 1  ;;  %3597 = vmatpush3.bf16.msra.mxu1 %v3596_v54  ;;  %v1698_v0 = vld [vmem:[%s4698_s2 + $0x70] sm:$0xff]  ;;  %v2291_v50 = vld [vmem:[%s4700_s6 + $0x18] sm:$0xff] }
 0x4b1   :  { %v1312_v4 = vshll.u32 %v1279_v60, 16  ;;  %v1317_v6 = vshll.u32 %v1280_v61, 16  ;;  %v1540_v9 = vrot.slane %v1279_v60, 1  ;;  %v1541_v10 = vrot.slane %v1280_v61, 1  ;;  %3598 = vmatprep.subr.bf16.mxu1 %v3823_v2 }
 0x4b2   :  { %v1302_v7 = vrot.slane %v1300_v63, 1  ;;  %v1310_v11 = vshrl.u32 %v1279_v60, 16  ;;  %v1307_v16 = vrot.slane %v1305_v3, 1  ;;  %v1538_v36 = vrot.slane %v1278_v62, 1  ;;  %v1696_v62 = vld [vmem:[%s4698_s2 + $0x60] sm:$0xff] }
 0x4b3   :  { %v1314_v12 = vrot.slane %v1312_v4, 1  ;;  %v1542_v18 = vsel %vm321_vm1, %v1540_v9, %v1541_v10  ;;  %v1319_v21 = vrot.slane %v1317_v6, 1  ;;  %v3602_v5 = vpack.c.bf16 %v1697_v59, %v1696_v62 }
 0x4b4   :  { %v1303_v13 = vor.u32 %v1302_v7, %v1298_v56  ;;  %v1539_v23 = vsel %vm321_vm1, %v1537_v35, %v1538_v36  ;;  %v3788_v35 = vld [vmem:[%s4699_s5 + $0x50] sm:$0xff]   ;;  %v3789_v36 = vld [vmem:[%s4699_s5 + $0x58] sm:$0xff]   ;;  %v4544_v24 = vpack.c.bf16 %v2291_v50, %v2290_v46 }
 0x4b5   :  { %v1315_v19 = vor.u32 %v1314_v12, %v1310_v11 }
 0x4b6   :  { %v1308_v26 = vsel %vm79_vm0, %v1303_v13, %v1307_v16 }
 0x4b7   :  { %3243 = vmatprep.mubr.bf16.mxu0 %v1308_v26  ;;  %v1320_v28 = vsel %vm79_vm0, %v1315_v19, %v1319_v21 }
 0x4b8   :  { %3244 = vmatmul.mubr.bf16.vlgmr.msra.gmra.mrb[8].mxu0 %v1320_v28 }
 0x4b9   :  { %3248 = vmatpush3.bf16.msra.mxu0 %v4314_v8  ;;  %3263 = vmatprep.mubr.bf16.mxu0 %v1277_v58  ;;  %v3775_v8 = vld [vmem:[%s4696_s1 + $0x28] sm:$0xff]   ;;  %v3599_v58 = vpack.c.bf16 %v1695_v57, %v1694_v55 }
 0x4ba   :  { %3249 = vmatprep.subr.bf16.mxu0 %v3771_v27  ;;  %v2293_v55 = vld [vmem:[%s4700_s6 + $0x28] sm:$0xff] }
 0x4bb   :  { %3600 = vmatpush3.bf16.msra.mxu1 %v3599_v58 }
 0x4bc   :  { %3601 = vmatprep.subr.bf16.mxu1 %v3823_v2 }
 0x4bd   :  { %3250 = vmatpush3.bf16.msra.mxu0 %v3771_v27 }
 0x4be   :  { %3251 = vmatprep.subr.bf16.mxu0 %v3772_v29 }
 0x4bf   :  { %3603 = vmatpush3.bf16.msra.mxu1 %v3602_v5 }
 0x4c0   :  { %3604 = vmatprep.subr.bf16.mxu1 %v3823_v2 }
 0x4c1   :  { %3252 = vmatpush3.bf16.msra.mxu0 %v3772_v29 }
 0x4c2   :  { %3253 = vmatprep.subr.bf16.mxu0 %v3773_v30 }
 0x4c5   :  { %3254 = vmatpush3.bf16.msra.mxu0 %v3773_v30 }
 0x4c6   :  { %3255 = vmatprep.subr.bf16.mxu0 %v3774_v31 }
 0x4c9   :  { %3256 = vmatpush3.bf16.msra.mxu0 %v3774_v31 }
 0x4ca   :  { %3257 = vmatprep.subr.bf16.mxu0 %v3775_v8 }
 0x4cd   :  { %3258 = vmatpush3.bf16.msra.mxu0 %v3775_v8 }
 0x4ce   :  { %3259 = vmatprep.subr.bf16.mxu0 %v3776_v32 }
 0x4d1   :  { %3260 = vmatpush3.bf16.msra.mxu0 %v3776_v32 }
 0x4d2   :  { %3261 = vmatprep.subr.bf16.mxu0 %v3777_v33 }
 0x4d5   :  { %3262 = vmatpush3.bf16.msra.mxu0 %v3777_v33  ;;  %v3786_v33 = vld [vmem:[%s4699_s5 + $0x40] sm:$0xff]  }
 0x4d6   :  { %3267 = vmatprep.subr.bf16.mxu0 %v3778_v34 }
 0x4d8   :  { %3264 = vmatmul.mubr.bf16.vlgmr.msra.gmra.mrb[8].mxu0 %v1279_v60  ;;  %v1699_v60 = vld [vmem:[%s4698_s2 + $0x78] sm:$0xff] }
 0x4d9   :  { %3268 = vmatpush3.bf16.msra.mxu0 %v3778_v34  ;;  %3283 = vmatprep.mubr.bf16.mxu0 %v1539_v23  ;;  %v3605_v61 = vpack.c.bf16 %v1699_v60, %v1698_v0  ;;  %v3787_v34 = vld [vmem:[%s4699_s5 + $0x48] sm:$0xff]   ;;  %v1844_v60 = vld [vmem:[%s4701_s3] sm:$0x1] }
 0x4da   :  { %3269 = vmatprep.subr.bf16.mxu0 %v3779_v37  ;;  %v3791_v23 = vld [vmem:[%s4699_s5 + $0x68] sm:$0xff]  }
 0x4db   :  { %3606 = vmatpush3.bf16.msra.mxu1 %v3605_v61 }
 0x4dc   :  { %3607 = vmatprep.subr.bf16.mxu1 %v3823_v2 }
 0x4dd   :  { %3270 = vmatpush3.bf16.msra.mxu0 %v3779_v37  ;;  %v3790_v37 = vld [vmem:[%s4699_s5 + $0x60] sm:$0xff]  }
 0x4de   :  { %3271 = vmatprep.subr.bf16.mxu0 %v3780_v25 }
 0x4e1   :  { %3272 = vmatpush3.bf16.msra.mxu0 %v3780_v25  ;;  %v3792_v25 = vld [vmem:[%s4699_s5 + $0x70] sm:$0xff]  }
 0x4e2   :  { %3273 = vmatprep.subr.bf16.mxu0 %v3781_v40 }
 0x4e5   :  { %3274 = vmatpush3.bf16.msra.mxu0 %v3781_v40  ;;  %v3793_v40 = vld [vmem:[%s4699_s5 + $0x78] sm:$0xff]  }
 0x4e6   :  { %3275 = vmatprep.subr.bf16.mxu0 %v3782_v41 }
 0x4e9   :  { %3276 = vmatpush3.bf16.msra.mxu0 %v3782_v41  ;;  %v4526_v41 = vld [vmem:[%s4699_s5] sm:$0xff]  }
 0x4ea   :  { %3277 = vmatprep.subr.bf16.mxu0 %v3783_v42 }
 0x4ed   :  { %3278 = vmatpush3.bf16.msra.mxu0 %v3783_v42 }
 0x4ee   :  { %3279 = vmatprep.subr.bf16.mxu0 %v3784_v44 }
 0x4f1   :  { %3280 = vmatpush3.bf16.msra.mxu0 %v3784_v44 }
 0x4f2   :  { %3281 = vmatprep.subr.bf16.mxu0 %v3785_v43 }
 0x4f5   :  { %3282 = vmatpush3.bf16.msra.mxu0 %v3785_v43  ;;  %v2288_v43 = vld [vmem:[%s4700_s6] sm:$0xff] }
 0x4f6   :  { %3631 = vmatprep.subr.bf16.mxu0 %v3823_v2 }
 0x4f8   :  { %3284 = vmatmul.mubr.bf16.vlgmr.msra.gmra.mrb[8].mxu0 %v1542_v18 }
 0x4f9   :  { %3449 = vmatprep.mubr.msk.f32.mxu0 %vm3824_vm2, %v3822_v1 }
 0x5cb   :  { %v4467_v63 = vpop.f32.mrb[8].mxu0 }
 0x5cc   :  { %v4469_v3 = vpop.f32.mrb[9].mxu0  ;;  %v1673_v10 = vmul.f32 %v4467_v63, %v4467_v63 }
 0x5cd   :  { %v4471_v4 = vpop.f32.mrb[10].mxu0  ;;  %v1671_v56 = vmul.f32 %v4469_v3, %v4469_v3 }
 0x5ce   :  { %v4473_v6 = vpop.f32.mrb[11].mxu0  ;;  %v1674_v13 = vmul.f32 %v4471_v4, %v4471_v4 }
 0x5cf   :  { %v1662_v7 = vadd.f32 %v4473_v6, %v4469_v3  ;;  %v1672_v9 = vmul.f32 %v4473_v6, %v4473_v6 }
 0x5d1   :  { %v1663_v11 = vadd.f32 %v4467_v63, %v1662_v7  ;;  %v1675_v12 = vadd.f32 %v1672_v9, %v1671_v56  ;;  %v1846_v7 = vld [vmem:[%s4702_s4] sm:$0x1] }
 0x5d3   :  { %v1664_v16 = vadd.f32 %v4471_v4, %v1663_v11  ;;  %v1676_v18 = vadd.f32 %v1675_v12, %v1673_v10 }
 0x5d5   :  { %v1665_v19 = vrot.slane %v1664_v16, 4  ;;  %v1677_v21 = vadd.f32 %v1676_v18, %v1674_v13 }
 0x5d7   :  { %v1666_v26 = vadd.f32 %v1665_v19, %v1664_v16  ;;  %v1678_v31 = vrot.slane %v1677_v21, 4 }
 0x5d9   :  { %v1667_v27 = vrot.slane %v1666_v26, 2  ;;  %v1679_v8 = vadd.f32 %v1678_v31, %v1677_v21 }
 0x5db   :  { %v1668_v28 = vadd.f32 %v1667_v27, %v1666_v26 }
 0x5dd   :  { %v1669_v29 = vrot.slane %v1668_v28, 1 }
 0x5df   :  { %v1670_v30 = vadd.f32 %v1669_v29, %v1668_v28 }
 0x5e1   :  { %3320 = vmatmul.mubr.f32.vlgmr.msra.gmra.mrb[8].mxu1 %v1670_v30 }
 0x5e2   :  { %3609 = vmatpush3.bf16.msra.mxu1 %v4326_v15  ;;  %3354 = vmatprep.mubr.msk.f32.mxu1 %vm3824_vm2, %v3822_v1  ;;  %v1680_v15 = vrot.slane %v1679_v8, 2 }
 0x5e3   :  { %3610 = vmatprep.subr.bf16.mxu1 %v3823_v2 }
 0x5e4   :  { %v1681_v32 = vadd.f32 %v1680_v15, %v1679_v8 }
 0x5e6   :  { %3612 = vmatpush3.bf16.msra.mxu1 %v4332_v17  ;;  %v1682_v17 = vrot.slane %v1681_v32, 1 }
 0x5e7   :  { %3613 = vmatprep.subr.bf16.mxu1 %v3823_v2 }
 0x5ea   :  { %3615 = vmatpush3.bf16.msra.mxu1 %v4342_v20  ;;  %v1683_v20 = vadd.f32 %v1682_v17, %v1681_v32 }
 0x5eb   :  { %3616 = vmatprep.subr.bf16.mxu1 %v3823_v2 }
 0x5ee   :  { %3618 = vmatpush3.bf16.msra.mxu1 %v3593_v48  ;;  %v4538_v48 = vpack.c.bf16 %v2289_v45, %v2288_v43 }
 0x5ef   :  { %3619 = vmatprep.subr.bf16.mxu1 %v3823_v2 }
 0x5f0   :  { %3633 = vmatpush3.bf16.msra.mxu0 %v4538_v48 }
 0x5f1   :  { %3634 = vmatprep.subr.bf16.mxu0 %v3823_v2 }
 0x5f2   :  { %3621 = vmatpush3.bf16.msra.mxu1 %v3596_v54  ;;  %v2292_v54 = vld [vmem:[%s4700_s6 + $0x20] sm:$0xff] }
 0x5f3   :  { %3622 = vmatprep.subr.bf16.mxu1 %v3823_v2  ;;  %v4554_v57 = vpack.c.bf16 %v2293_v55, %v2292_v54 }
 0x5f4   :  { %3636 = vmatpush3.bf16.msra.mxu0 %v4544_v24 }
 0x5f5   :  { %3637 = vmatprep.subr.bf16.mxu0 %v3823_v2 }
 0x5f6   :  { %3624 = vmatpush3.bf16.msra.mxu1 %v3599_v58 }
 0x5f7   :  { %3625 = vmatprep.subr.bf16.mxu1 %v3823_v2 }
 0x5f8   :  { %3639 = vmatpush3.bf16.msra.mxu0 %v4554_v57 }
 0x5f9   :  { %3640 = vmatprep.subr.bf16.mxu0 %v3823_v2 }
 0x5fa   :  { %3627 = vmatpush3.bf16.msra.mxu1 %v3602_v5 }
 0x5fb   :  { %3628 = vmatprep.subr.bf16.mxu1 %v3823_v2 }
 0x5fe   :  { %3630 = vmatpush3.bf16.msra.mxu1 %v3605_v61 }
 0x5ff   :  { %3357 = vmatprep.subr.bf16.mxu1 %v3786_v33 }
 0x601   :  { %3355 = vmatmul.mubr.f32.vlgmr.msra.gmra.mrb[10].mxu1 %v1683_v20 }
 0x602   :  { %3358 = vmatpush3.bf16.msra.mxu1 %v3786_v33 }
 0x603   :  { %3359 = vmatprep.subr.bf16.mxu1 %v3787_v34 }
 0x606   :  { %3360 = vmatpush3.bf16.msra.mxu1 %v3787_v34 }
 0x607   :  { %3361 = vmatprep.subr.bf16.mxu1 %v3788_v35 }
 0x60a   :  { %3362 = vmatpush3.bf16.msra.mxu1 %v3788_v35 }
 0x60b   :  { %3363 = vmatprep.subr.bf16.mxu1 %v3789_v36 }
 0x60e   :  { %3364 = vmatpush3.bf16.msra.mxu1 %v3789_v36 }
 0x60f   :  { %3365 = vmatprep.subr.bf16.mxu1 %v3790_v37 }
 0x612   :  { %3366 = vmatpush3.bf16.msra.mxu1 %v3790_v37 }
 0x613   :  { %3367 = vmatprep.subr.bf16.mxu1 %v3791_v23 }
 0x616   :  { %3368 = vmatpush3.bf16.msra.mxu1 %v3791_v23 }
 0x617   :  { %3369 = vmatprep.subr.bf16.mxu1 %v3792_v25 }
 0x61a   :  { %3370 = vmatpush3.bf16.msra.mxu1 %v3792_v25 }
 0x61b   :  { %3371 = vmatprep.subr.bf16.mxu1 %v3793_v40 }
 0x61e   :  { %3372 = vmatpush3.bf16.msra.mxu1 %v3793_v40 }
 0x61f   :  { %3377 = vmatprep.subr.bf16.mxu1 %v4526_v41 }
 0x6b4   :  { %v1766_v42 = vpop.f32.mrb[8].mxu1 }
 0x6b5   :  { %v3321_v44 = vpop.f32.mrb[9].mxu1  ;;  %v1840_v58 = vmul.f32 %v1766_v42, %v1766_v42 }
 0x6d4   :  { %v1836_v62 = vpop.f32.mrb[10].mxu1 }
 0x6d5   :  { %v1841_v59 = vsub.f32 %v1836_v62, %v1840_v58  ;;  %v3356_v0 = vpop.f32.mrb[11].mxu1 }
 0x6d7   :  { %v1842_v5 = vadd.f32 1e-05, %v1841_v59  ;;  %v3795_v59 = vld [vmem:[%s4699_s5 + $0x8] sm:$0xff]  }
 0x6d9   :  { %3814 = vrsqrt.f32 %v1842_v5  ;;  %v3796_v5 = vld [vmem:[%s4699_s5 + $0x10] sm:$0xff]  }
 0x6e3   :  { %v3815_v61 = vpop.eup %3814 }
 0x6e4   :  { %v1845_v56 = vmul.f32 %v3815_v61, %v1844_v60  ;;  %v3797_v60 = vld [vmem:[%s4699_s5 + $0x18] sm:$0xff]   ;;  %v3798_v61 = vld [vmem:[%s4699_s5 + $0x20] sm:$0xff]  }
 0x6e6   :  { %v1847_v9 = vmul.f32 %v1845_v56, %v1766_v42  ;;  %v1852_v10 = vrot.slane %v1845_v56, %v4156_v14  ;;  %v3800_v56 = vld [vmem:[%s4699_s5 + $0x30] sm:$0xff]  }
 0x6e8   :  { %v1848_v11 = vsub.f32 %v1846_v7, %v1847_v9  ;;  %v1853_v12 = vmul.f32 %v1852_v10, %v4469_v3  ;;  %v1854_v13 = vmul.f32 %v1852_v10, %v4473_v6  ;;  %v1855_v16 = vmul.f32 %v4467_v63, %v1852_v10  ;;  %v3801_v7 = vld [vmem:[%s4699_s5 + $0x38] sm:$0xff]   ;;  %v3802_v9 = vld [vmem:[%s4699_s5 + $0x80] sm:$0xff]  }
 0x6e9   :  { %v1856_v18 = vmul.f32 %v4471_v4, %v1852_v10 }
 0x6ea   :  { %v1861_v19 = vrot.slane %v1848_v11, %v4156_v14 }
 0x6ec   :  { %v1863_v21 = vadd.f32 %v1861_v19, %v1853_v12  ;;  %v1864_v26 = vadd.f32 %v1861_v19, %v1854_v13  ;;  %v1865_v27 = vadd.f32 %v1861_v19, %v1855_v16  ;;  %v1866_v28 = vadd.f32 %v1861_v19, %v1856_v18  ;;  %v3803_v12 = vld [vmem:[%s4699_s5 + $0x88] sm:$0xff]   ;;  %v3804_v16 = vld [vmem:[%s4699_s5 + $0x90] sm:$0xff]   ;;  %v3805_v18 = vld [vmem:[%s4699_s5 + $0x98] sm:$0xff]  }
 0x6ed   :  { %v3806_v19 = vld [vmem:[%s4699_s5 + $0xa0] sm:$0xff]  }
 0x6ee   :  { %v1867_v29 = vmax.f32 %v1863_v21, 0.0  ;;  %v1868_v30 = vmax.f32 %v1864_v26, 0.0  ;;  %v1869_v31 = vmax.f32 %v1865_v27, 0.0  ;;  %v1870_v8 = vmax.f32 %v1866_v28, 0.0  ;;  %v3807_v21 = vld [vmem:[%s4699_s5 + $0xa8] sm:$0xff]   ;;  %v3808_v26 = vld [vmem:[%s4699_s5 + $0xb0] sm:$0xff]  }
 0x6ef   :  { %v3809_v27 = vld [vmem:[%s4699_s5 + $0xb8] sm:$0xff]   ;;  %v2294_v28 = vld [vmem:[%s4700_s6 + $0x30] sm:$0xff] }
 0x6f0   :  { %1871 = vst [vmem:[#allocation3 + $0x1] sm:$0xff] %v1867_v29  ;;  %1872 = vst [vmem:[#allocation3 + $0x9] sm:$0xff] %v1868_v30  ;;  %v2295_v29 = vld [vmem:[%s4700_s6 + $0x38] sm:$0xff] }
 0x6f1   :  { %1873 = vst [vmem:[#allocation3 + $0x19] sm:$0xff] %v1869_v31  ;;  %1874 = vst [vmem:[#allocation3 + $0x21] sm:$0xff] %v1870_v8  ;;  %v3641_v30 = vpack.c.bf16 %v2295_v29, %v2294_v28  ;;  %v2296_v31 = vld [vmem:[%s4700_s6 + $0x40] sm:$0xff]  ;;  %v2297_v8 = vld [vmem:[%s4700_s6 + $0x48] sm:$0xff] }
 0x6f3   :  { %3642 = vmatpush3.bf16.msra.mxu0 %v3641_v30 }
 0x6f4   :  { %3643 = vmatprep.subr.bf16.mxu0 %v3823_v2 }
 0x6f7   :  { %v1875_v3 = vld [vmem:[#allocation3] sm:$0xff]  ;;  %v1876_v6 = vld [vmem:[#allocation3 + $0x8] sm:$0xff]  ;;  %v1877_v15 = vld [vmem:[#allocation3 + $0x10] sm:$0x3] }
 0x6f8   :  { %v1881_v63 = vpack.c.bf16 %v1876_v6, %v1875_v3  ;;  %v1882_v32 = vpack.c.bf16 %v1877_v15, %v1877_v15  ;;  %v1878_v4 = vld [vmem:[#allocation3 + $0x18] sm:$0xff]  ;;  %v1879_v17 = vld [vmem:[#allocation3 + $0x20] sm:$0xff]  ;;  %v1880_v20 = vld [vmem:[#allocation3 + $0x28] sm:$0x3]  ;;  %v3644_v3 = vpack.c.bf16 %v2297_v8, %v2296_v31 }
 0x6f9   :  { %v1883_v33 = vpack.c.bf16 %v1879_v17, %v1878_v4  ;;  %v1884_v34 = vpack.c.bf16 %v1880_v20, %v1880_v20  ;;  %v2298_v6 = vld [vmem:[%s4700_s6 + $0x50] sm:$0xff]  ;;  %v2299_v15 = vld [vmem:[%s4700_s6 + $0x58] sm:$0xff]  ;;  %v2301_v4 = vld [vmem:[%s4700_s6 + $0x68] sm:$0xff] }
 0x6fa   :  { %v1904_v35 = vshll.u32 %v1881_v63, 16  ;;  %v1909_v36 = vshll.u32 %v1882_v32, 16  ;;  %v1902_v25 = vshrl.u32 %v1881_v63, 16  ;;  %v2141_v10 = vrot.slane %v1881_v63, 1  ;;  %3645 = vmatpush3.bf16.msra.mxu0 %v3644_v3  ;;  %v2302_v20 = vld [vmem:[%s4700_s6 + $0x70] sm:$0xff] }
 0x6fb   :  { %v1916_v37 = vshll.u32 %v1883_v33, 16  ;;  %v1921_v23 = vshll.u32 %v1884_v34, 16  ;;  %v2144_v42 = vrot.slane %v1883_v33, 1  ;;  %v2145_v44 = vrot.slane %v1884_v34, 1  ;;  %3646 = vmatprep.subr.bf16.mxu0 %v3823_v2 }
 0x6fc   :  { %v1906_v40 = vrot.slane %v1904_v35, 1  ;;  %v1914_v43 = vshrl.u32 %v1883_v33, 16  ;;  %v1911_v50 = vrot.slane %v1909_v36, 1  ;;  %v2142_v11 = vrot.slane %v1882_v32, 1  ;;  %v2300_v32 = vld [vmem:[%s4700_s6 + $0x60] sm:$0xff] }
 0x6fd   :  { %v1918_v45 = vrot.slane %v1916_v37, 1  ;;  %v2146_v54 = vsel %vm321_vm1, %v2144_v42, %v2145_v44  ;;  %v1923_v58 = vrot.slane %v1921_v23, 1  ;;  %v3650_v17 = vpack.c.bf16 %v2301_v4, %v2300_v32 }
 0x6fe   :  { %v1907_v46 = vor.u32 %v1906_v40, %v1902_v25  ;;  %v2143_v13 = vsel %vm321_vm1, %v2141_v10, %v2142_v11 }
 0x6ff   :  { %v1919_v55 = vor.u32 %v1918_v45, %v1914_v43 }
 0x700   :  { %v1912_v62 = vsel %vm79_vm0, %v1907_v46, %v1911_v50 }
 0x701   :  { %3373 = vmatprep.mubr.bf16.mxu1 %v1912_v62  ;;  %v1924_v0 = vsel %vm79_vm0, %v1919_v55, %v1923_v58 }
 0x702   :  { %3374 = vmatmul.mubr.bf16.vlgmr.msra.gmra.mrb[12].mxu1 %v1924_v0 }
 0x703   :  { %3378 = vmatpush3.bf16.msra.mxu1 %v4526_v41  ;;  %3393 = vmatprep.mubr.bf16.mxu1 %v1881_v63  ;;  %v3799_v41 = vld [vmem:[%s4699_s5 + $0x28] sm:$0xff]   ;;  %v3647_v63 = vpack.c.bf16 %v2299_v15, %v2298_v6 }
 0x704   :  { %3379 = vmatprep.subr.bf16.mxu1 %v3795_v59 }
 0x705   :  { %3648 = vmatpush3.bf16.msra.mxu0 %v3647_v63 }
 0x706   :  { %3649 = vmatprep.subr.bf16.mxu0 %v3823_v2 }
 0x707   :  { %3380 = vmatpush3.bf16.msra.mxu1 %v3795_v59 }
 0x708   :  { %3381 = vmatprep.subr.bf16.mxu1 %v3796_v5 }
 0x709   :  { %3651 = vmatpush3.bf16.msra.mxu0 %v3650_v17 }
 0x70a   :  { %3652 = vmatprep.subr.bf16.mxu0 %v3823_v2 }
 0x70b   :  { %3382 = vmatpush3.bf16.msra.mxu1 %v3796_v5 }
 0x70c   :  { %3383 = vmatprep.subr.bf16.mxu1 %v3797_v60 }
 0x70f   :  { %3384 = vmatpush3.bf16.msra.mxu1 %v3797_v60 }
 0x710   :  { %3385 = vmatprep.subr.bf16.mxu1 %v3798_v61 }
 0x713   :  { %3386 = vmatpush3.bf16.msra.mxu1 %v3798_v61 }
 0x714   :  { %3387 = vmatprep.subr.bf16.mxu1 %v3799_v41 }
 0x717   :  { %3388 = vmatpush3.bf16.msra.mxu1 %v3799_v41 }
 0x718   :  { %3389 = vmatprep.subr.bf16.mxu1 %v3800_v56 }
 0x71b   :  { %3390 = vmatpush3.bf16.msra.mxu1 %v3800_v56 }
 0x71c   :  { %3391 = vmatprep.subr.bf16.mxu1 %v3801_v7 }
 0x71f   :  { %3392 = vmatpush3.bf16.msra.mxu1 %v3801_v7 }
 0x720   :  { %3397 = vmatprep.subr.bf16.mxu1 %v3802_v9 }
 0x722   :  { %3394 = vmatmul.mubr.bf16.vlgmr.msra.gmra.mrb[12].mxu1 %v1883_v33  ;;  %v2303_v33 = vld [vmem:[%s4700_s6 + $0x78] sm:$0xff] }
 0x723   :  { %3398 = vmatpush3.bf16.msra.mxu1 %v3802_v9  ;;  %3413 = vmatprep.mubr.bf16.mxu1 %v2143_v13  ;;  %v3653_v34 = vpack.c.bf16 %v2303_v33, %v2302_v20 }
 0x724   :  { %3399 = vmatprep.subr.bf16.mxu1 %v3803_v12 }
 0x725   :  { %3654 = vmatpush3.bf16.msra.mxu0 %v3653_v34 }
 0x726   :  { %3655 = vmatprep.subr.bf16.mxu0 %v3823_v2 }
 0x727   :  { %3400 = vmatpush3.bf16.msra.mxu1 %v3803_v12 }
 0x728   :  { %3401 = vmatprep.subr.bf16.mxu1 %v3804_v16 }
 0x72b   :  { %3402 = vmatpush3.bf16.msra.mxu1 %v3804_v16  ;;  %v2448_v16 = vld [vmem:[%s4703_s7] sm:$0x1] }
 0x72c   :  { %3403 = vmatprep.subr.bf16.mxu1 %v3805_v18 }
 0x72f   :  { %3404 = vmatpush3.bf16.msra.mxu1 %v3805_v18 }
 0x730   :  { %3405 = vmatprep.subr.bf16.mxu1 %v3806_v19 }
 0x733   :  { %3406 = vmatpush3.bf16.msra.mxu1 %v3806_v19 }
 0x734   :  { %3407 = vmatprep.subr.bf16.mxu1 %v3807_v21 }
 0x737   :  { %3408 = vmatpush3.bf16.msra.mxu1 %v3807_v21 }
 0x738   :  { %3409 = vmatprep.subr.bf16.mxu1 %v3808_v26 }
 0x73b   :  { %3410 = vmatpush3.bf16.msra.mxu1 %v3808_v26 }
 0x73c   :  { %3411 = vmatprep.subr.bf16.mxu1 %v3809_v27 }
 0x73f   :  { %3412 = vmatpush3.bf16.msra.mxu1 %v3809_v27 }
 0x742   :  { %3414 = vmatmul.mubr.bf16.vlgmr.msra.gmra.mrb[12].mxu1 %v2146_v54 }
 0x815   :  { %v3415_v35 = vpop.f32.mrb[12].mxu1 }
 0x816   :  { %v2247_v36 = vpop.f32.mrb[13].mxu1  ;;  %v2277_v44 = vmul.f32 %v3415_v35, %v3415_v35 }
 0x817   :  { %v3416_v37 = vpop.f32.mrb[14].mxu1  ;;  %v2275_v25 = vmul.f32 %v2247_v36, %v2247_v36 }
 0x818   :  { %v2250_v23 = vpop.f32.mrb[15].mxu1  ;;  %v2278_v46 = vmul.f32 %v3416_v37, %v3416_v37 }
 0x819   :  { %v2266_v40 = vadd.f32 %v2250_v23, %v2247_v36  ;;  %v2276_v42 = vmul.f32 %v2250_v23, %v2250_v23 }
 0x81b   :  { %v2267_v43 = vadd.f32 %v3415_v35, %v2266_v40  ;;  %v2279_v45 = vadd.f32 %v2276_v42, %v2275_v25 }
 0x81d   :  { %v2268_v50 = vadd.f32 %v3416_v37, %v2267_v43  ;;  %v2280_v54 = vadd.f32 %v2279_v45, %v2277_v44 }
 0x81f   :  { %v2269_v55 = vrot.slane %v2268_v50, 4  ;;  %v2281_v58 = vadd.f32 %v2280_v54, %v2278_v46 }
 0x821   :  { %v2270_v62 = vadd.f32 %v2269_v55, %v2268_v50  ;;  %v2282_v61 = vrot.slane %v2281_v58, 4 }
 0x823   :  { %v2271_v59 = vrot.slane %v2270_v62, 2  ;;  %v2283_v41 = vadd.f32 %v2282_v61, %v2281_v58 }
 0x825   :  { %v2272_v0 = vadd.f32 %v2271_v59, %v2270_v62 }
 0x827   :  { %v2273_v5 = vrot.slane %v2272_v0, 1 }
 0x829   :  { %v2274_v60 = vadd.f32 %v2273_v5, %v2272_v0 }
 0x82b   :  { %3450 = vmatmul.mubr.f32.vlgmr.msra.gmra.mrb[12].mxu0 %v2274_v60 }
 0x82c   :  { %3657 = vmatpush3.bf16.msra.mxu0 %v4538_v48  ;;  %3484 = vmatprep.mubr.msk.f32.mxu0 %vm3824_vm2, %v3822_v1  ;;  %v2284_v48 = vrot.slane %v2283_v41, 2 }
 0x82d   :  { %3658 = vmatprep.subr.bf16.mxu0 %v3823_v2 }
 0x82e   :  { %v2285_v1 = vadd.f32 %v2284_v48, %v2283_v41 }
 0x830   :  { %3660 = vmatpush3.bf16.msra.mxu0 %v4544_v24  ;;  %v2286_v24 = vrot.slane %v2285_v1, 1 }
 0x831   :  { %3661 = vmatprep.subr.bf16.mxu0 %v3823_v2 }
 0x834   :  { %3663 = vmatpush3.bf16.msra.mxu0 %v4554_v57  ;;  %v2287_v57 = vadd.f32 %v2286_v24, %v2285_v1 }
 0x835   :  { %3664 = vmatprep.subr.bf16.mxu0 %v3823_v2 }
 0x838   :  { %3666 = vmatpush3.bf16.msra.mxu0 %v3641_v30 }
 0x839   :  { %3667 = vmatprep.subr.bf16.mxu0 %v3823_v2 }
 0x83c   :  { %3669 = vmatpush3.bf16.msra.mxu0 %v3644_v3 }
 0x83d   :  { %3670 = vmatprep.subr.bf16.mxu0 %v3823_v2 }
 0x840   :  { %3672 = vmatpush3.bf16.msra.mxu0 %v3647_v63 }
 0x841   :  { %3673 = vmatprep.subr.bf16.mxu0 %v3823_v2 }
 0x844   :  { %3675 = vmatpush3.bf16.msra.mxu0 %v3650_v17 }
 0x845   :  { %3676 = vmatprep.subr.bf16.mxu0 %v3823_v2  ;;  %v2450_v2 = vld [vmem:[%s4704_s8] sm:$0x1] }
 0x848   :  { %3678 = vmatpush3.bf16.msra.mxu0 %v3653_v34 }
 0x84b   :  { %3485 = vmatmul.mubr.f32.vlgmr.msra.gmra.mrb[14].mxu0 %v2287_v57 }
 0x8fe   :  { %v2370_v56 = vpop.f32.mrb[12].mxu0 }
 0x8ff   :  { %v3451_v7 = vpop.f32.mrb[13].mxu0  ;;  %v2444_v9 = vmul.f32 %v2370_v56, %v2370_v56 }
 0x91e   :  { %v2440_v10 = vpop.f32.mrb[14].mxu0 }
 0x91f   :  { %v2445_v11 = vsub.f32 %v2440_v10, %v2444_v9  ;;  %v3486_v12 = vpop.f32.mrb[15].mxu0 }
 0x921   :  { %v2446_v13 = vadd.f32 1e-05, %v2445_v11 }
 0x923   :  { %3816 = vrsqrt.f32 %v2446_v13 }
 0x92d   :  { %v3817_v18 = vpop.eup %3816 }
 0x92e   :  { %v2449_v19 = vmul.f32 %v3817_v18, %v2448_v16 }
 0x930   :  { %v2451_v21 = vmul.f32 %v2449_v19, %v2370_v56  ;;  %v2456_v26 = vrot.slane %v2449_v19, %v4156_v14 }
 0x932   :  { %v2452_v27 = vsub.f32 %v2450_v2, %v2451_v21  ;;  %v2457_v28 = vmul.f32 %v2456_v26, %v2247_v36  ;;  %v2458_v29 = vmul.f32 %v2456_v26, %v2250_v23  ;;  %v2459_v30 = vmul.f32 %v3415_v35, %v2456_v26 }
 0x933   :  { %v2460_v31 = vmul.f32 %v3416_v37, %v2456_v26 }
 0x934   :  { %v2465_v8 = vrot.slane %v2452_v27, %v4156_v14 }
 0x936   :  { %v2467_v3 = vadd.f32 %v2465_v8, %v2457_v28  ;;  %v2468_v6 = vadd.f32 %v2465_v8, %v2458_v29  ;;  %v2469_v15 = vadd.f32 %v2465_v8, %v2459_v30  ;;  %v2470_v63 = vadd.f32 %v2465_v8, %v2460_v31 }
 0x938   :  { %v2471_v32 = vadd.f32 %v2467_v3, %v1263_v38  ;;  %v2472_v4 = vadd.f32 %v2468_v6, %v1264_v39  ;;  %v2473_v17 = vadd.f32 %v2469_v15, %v1265_v52  ;;  %v2474_v20 = vadd.f32 %v2470_v63, %v1266_v53 }
 0x93a   :  { %v2475_v33 = vmax.f32 %v2471_v32, 0.0  ;;  %v2476_v34 = vmax.f32 %v2472_v4, 0.0  ;;  %v2477_v35 = vmax.f32 %v2473_v17, 0.0  ;;  %v2478_v14 = vmax.f32 %v2474_v20, 0.0 }
 0x93c   :  { %2479 = vst [vmem:[%s4705_s9] sm:$0xff] %v2475_v33  ;;  %2480 = vst [vmem:[%s4705_s9 + $0x8] sm:$0xff] %v2476_v34 }
 0x93d   :  { %2481 = vst [vmem:[%s4705_s9 + $0x10] sm:$0xff] %v2477_v35  ;;  %2482 = vst [vmem:[%s4705_s9 + $0x18] sm:$0xff] %v2478_v14 }

</bundles_post_ra>
